<compile_context>
chip_gen: v7x
topology: tpu7x:2x2x1
jax: 0.10.0
libtpu: 0.0.40
codegen_flags: <defaults>
</compile_context>

<pallas_src>
import numpy as np

import jax
import jax.numpy as jnp
from jax import lax
from jax.experimental import pallas as pl
from jax.experimental.pallas import tpu as pltpu

F32 = jnp.float32
BN_EPS = 1e-5


# --------------------------------------------------------------------------
# Kernel helpers
# --------------------------------------------------------------------------
def _mm(a, b):
    return jnp.dot(a, b, preferred_element_type=F32)


def _relu(z):
    return jnp.maximum(z, 0.0)


def _im2col(even, odd, lout):
    """Tap matrix (rows, 3*C) for Conv1d(k=3, stride=2, pad=1).

    even/odd are the stride-2 row slabs of a batch-major activation
    (row j = b*lout + m -> sample b, output position m).  Lane order of the
    result is [k=0 | k=1 | k=2] channel blocks."""
    half, c = even.shape
    # left tap (input position 2m-1) = odd slab shifted down one output row,
    # zeroed at m == 0 of every sample (conv zero padding).
    left = jnp.concatenate([jnp.zeros((1, c), F32), odd[:half - 1, :]], axis=0)
    ridx = lax.broadcasted_iota(jnp.int32, (half, 1), 0)
    left = jnp.where(ridx % lout == 0, 0.0, left)
    return jnp.concatenate([left, even, odd], axis=1)


def _conv_step(src_ref, w_ref, shift, lout):
    """Conv1d(k=3, s=2, p=1) + folded BN + ReLU as ONE fat-K matmul."""
    rows = src_ref.shape[0]
    half = rows // 2
    even = src_ref[pl.ds(0, half, stride=2), :]    # input positions 2m   (k=1)
    odd = src_ref[pl.ds(1, half, stride=2), :]     # input positions 2m+1 (k=2)
    taps = _im2col(even, odd, lout)
    return _relu(_mm(taps, w_ref[...]) + shift)


# --------------------------------------------------------------------------
# Pallas kernel: whole forward pass, batched
# --------------------------------------------------------------------------
def fusion_kernel(user_ref, textT_ref, va_ref,
                  tw1_ref, tw2_ref, tbias_ref,
                  cw1_ref, cw2_ref, cw3_ref, cw4_ref, cw5_ref,
                  mw_ref, shifts_ref, smallw_ref,
                  out_ref,
                  tcol, s2, s3, s4, s5):
    B = user_ref.shape[0]
    sw = smallw_ref[...]        # (40, 8)   user-MLP + last-layer weights
    sh = shifts_ref[...]        # (16, 128) folded biases / shifts

    # ---- user MLP (row form, batch on sublanes) ---------------------------
    h = _relu(_mm(user_ref[...], sw[0:3, :]) + sh[8:9, 0:8])
    h = _relu(_mm(h, sw[3:11, :]) + sh[9:10, 0:8])
    h = _relu(_mm(h, sw[11:19, :]) + sh[10:11, 0:8])
    u = _mm(h, sw[19:27, 0:1]) + sh[11:12, 0:1]                     # (B, 1)

    # ---- text encoder (column form: features on sublanes) -----------------
    tb = tbias_ref[...]                                             # (128, 2)
    th = _relu(_mm(tw1_ref[...], textT_ref[...]) + tb[:, 0:1])      # (128, B)
    t_c = _mm(tw2_ref[...], th) + tb[:, 1:2]                        # (128, B)
    # Scatter the text channel into a batch-major (B*128, 1) column.
    # TODO(synk): replace unrolled per-sample stores for large B.
    for b in range(B):
        tcol[b * 128:(b + 1) * 128, :] = t_c[:, b:b + 1]

    # ---- conv1: channels [visual, aural, text], Cin=3 -> Cout=8 -----------
    half1 = B * 64
    v_e = va_ref[pl.ds(0, half1, stride=2), :]
    v_o = va_ref[pl.ds(1, half1, stride=2), :]
    t_e = tcol[pl.ds(0, half1, stride=2), :]
    t_o = tcol[pl.ds(1, half1, stride=2), :]
    taps1 = _im2col(jnp.concatenate([v_e, t_e], axis=1),
                    jnp.concatenate([v_o, t_o], axis=1), 64)
    s2[...] = _relu(_mm(taps1, cw1_ref[...]) + sh[0:1, 0:8])        # (B*64, 8)

    # ---- conv2..conv4 ------------------------------------------------------
    s3[...] = _conv_step(s2, cw2_ref, sh[1:2, 0:16], 32)            # (B*32, 16)
    s4[...] = _conv_step(s3, cw3_ref, sh[2:3, 0:32], 16)            # (B*16, 32)
    s5[...] = _conv_step(s4, cw4_ref, sh[3:4, 0:64], 8)             # (B*8, 64)

    # ---- conv5: k=8 "valid" conv == single (B, 512) @ (512, 128) matmul ---
    x5 = jnp.concatenate(
        [s5[pl.ds(m, B, stride=8), :] for m in range(8)], axis=1)   # (B, 512)
    med = _relu(_mm(x5, cw5_ref[...]) + sh[4:5, :])                 # (B, 128)

    # ---- media_layer + last_layer (dropout = identity in eval) ------------
    m8 = _mm(med, mw_ref[...]) + sh[5:6, 0:8]                       # (B, 8)
    out = _mm(m8, sw[27:35, 0:3]) + u * sw[35:36, 0:3] + sh[6:7, 0:3]
    out_ref[...] = out                                              # (B, 3)


# --------------------------------------------------------------------------
# Host-side parameter packing (BN folded, batch-independent)
# --------------------------------------------------------------------------
def pack_params(p):
    scale = np.float32(1.0 / np.sqrt(1.0 + BN_EPS))  # eval BN: gamma=1, rv=1

    def fold_conv(w):            # torch (Cout, Cin, K) -> (K*Cin, Cout), k-major
        w = np.asarray(w)
        cout, cin, k = w.shape
        return jnp.asarray(scale * np.transpose(w, (2, 1, 0)).reshape(k * cin, cout))

    cw = [fold_conv(p[f"c{i}w"]) for i in (1, 2, 3, 4, 5)]

    tw1 = np.zeros((128, 24), np.float32)
    tw1[:, 0:20] = np.asarray(p["tw1"])                          # K padded to 24
    tw2 = np.asarray(p["tw2"])                                   # (128, 128)
    tbias = np.stack([np.asarray(p["tb1"]), np.asarray(p["tb2"])], axis=1)  # (128,2)

    mw = np.asarray(p["mw"]).T                                   # (128, 8)

    smallw = np.zeros((40, 8), np.float32)
    smallw[0:3, :] = np.asarray(p["uw1"]).T
    smallw[3:11, :] = np.asarray(p["uw2"]).T
    smallw[11:19, :] = np.asarray(p["uw3"]).T
    smallw[19:27, 0:1] = np.asarray(p["uw4"]).T
    smallw[27:36, 0:3] = np.asarray(p["lw"]).T

    shifts = np.zeros((16, 128), np.float32)
    for row, i in enumerate((1, 2, 3, 4, 5)):
        b = np.asarray(p[f"c{i}b"])
        shifts[row, 0:b.shape[0]] = scale * b                    # folded BN shift
    shifts[5, 0:8] = np.asarray(p["mb"])
    shifts[6, 0:3] = np.asarray(p["lb"])
    shifts[8, 0:8] = np.asarray(p["ub1"])
    shifts[9, 0:8] = np.asarray(p["ub2"])
    shifts[10, 0:8] = np.asarray(p["ub3"])
    shifts[11, 0:1] = np.asarray(p["ub4"])

    return (jnp.asarray(tw1), jnp.asarray(tw2), jnp.asarray(tbias),
            *cw, jnp.asarray(mw), jnp.asarray(shifts), jnp.asarray(smallw))


# --------------------------------------------------------------------------
# Wrapper
# --------------------------------------------------------------------------
def fusion_forward(user, aural, visual, text, packed):
    B = user.shape[0]
    textT = jnp.concatenate([text, jnp.zeros((B, 4), F32)], axis=1).T   # (24, B)
    va = jnp.stack([visual.reshape(-1), aural.reshape(-1)], axis=1)     # (B*128, 2)

    ops = [user, textT, va, *packed]
    return pl.pallas_call(
        fusion_kernel,
        out_shape=jax.ShapeDtypeStruct((B, 3), F32),
        in_specs=[pl.BlockSpec(memory_space=pltpu.MemorySpace.VMEM)] * len(ops),
        out_specs=pl.BlockSpec(memory_space=pltpu.MemorySpace.VMEM),
        scratch_shapes=[
            pltpu.VMEM((B * 128, 1), F32),   # text channel column
            pltpu.VMEM((B * 64, 8), F32),    # conv1 out / conv2 in
            pltpu.VMEM((B * 32, 16), F32),   # conv2 out / conv3 in
            pltpu.VMEM((B * 16, 32), F32),   # conv3 out / conv4 in
            pltpu.VMEM((B * 8, 64), F32),    # conv4 out / conv5 in
        ],
    )(*ops)


# --------------------------------------------------------------------------
# Deterministic parameter construction (torch layouts)
# --------------------------------------------------------------------------
def init_params(key):
    keys = iter(jax.random.split(key, 40))
    p = {}

    def lin(out_d, in_d):
        w = 0.1 * jax.random.normal(next(keys), (out_d, in_d), F32)
        b = 0.1 * jax.random.normal(next(keys), (out_d,), F32)
        return w, b

    p["uw1"], p["ub1"] = lin(8, 3)
    p["uw2"], p["ub2"] = lin(8, 8)
    p["uw3"], p["ub3"] = lin(8, 8)
    p["uw4"], p["ub4"] = lin(1, 8)
    p["tw1"], p["tb1"] = lin(128, 20)
    p["tw2"], p["tb2"] = lin(128, 128)
    for i, cout, cin, k in [(1, 8, 3, 3), (2, 16, 8, 3), (3, 32, 16, 3),
                            (4, 64, 32, 3), (5, 128, 64, 8)]:
        p[f"c{i}w"] = 0.1 * jax.random.normal(next(keys), (cout, cin, k), F32)
        p[f"c{i}b"] = 0.1 * jax.random.normal(next(keys), (cout,), F32)
    p["mw"], p["mb"] = lin(8, 128)
    p["lw"], p["lb"] = lin(3, 9)
    return p


# --------------------------------------------------------------------------
# Pure-JAX reference (correctness check)
# --------------------------------------------------------------------------
def reference_forward(user, aural, visual, text, p):
    relu = lambda z: jnp.maximum(z, 0.0)
    scale = 1.0 / jnp.sqrt(1.0 + BN_EPS)

    u = relu(user @ p["uw1"].T + p["ub1"])
    u = relu(u @ p["uw2"].T + p["ub2"])
    u = relu(u @ p["uw3"].T + p["ub3"])
    u = u @ p["uw4"].T + p["ub4"]

    t = relu(text @ p["tw1"].T + p["tb1"])
    t = t @ p["tw2"].T + p["tb2"]

    media = jnp.stack([visual, aural, t], axis=1)          # (B, 3, 128)

    def conv_bn_relu(x, w, b, stride, pad):
        y = lax.conv_general_dilated(x, w, (stride,), [(pad, pad)],
                                     dimension_numbers=("NCH", "OIH", "NCH"))
        return relu(scale * (y + b[None, :, None]))        # eval-mode BN

    media = conv_bn_relu(media, p["c1w"], p["c1b"], 2, 1)
    media = conv_bn_relu(media, p["c2w"], p["c2b"], 2, 1)
    media = conv_bn_relu(media, p["c3w"], p["c3b"], 2, 1)
    media = conv_bn_relu(media, p["c4w"], p["c4b"], 2, 1)
    media = conv_bn_relu(media, p["c5w"], p["c5b"], 1, 0)
    media = media[:, :, 0]                                 # (B, 128)

    m8 = media @ p["mw"].T + p["mb"]
    fusion = jnp.concatenate([m8, u], axis=1)              # (B, 9)
    return fusion @ p["lw"].T + p["lb"]                    # (B, 3)


# --------------------------------------------------------------------------
if __name__ == "__main__":
    key = jax.random.PRNGKey(0)
    kd, kp = jax.random.split(key)
    k1, k2, k3, k4 = jax.random.split(kd, 4)

    B = 2
    user = jax.random.normal(k1, (B, 3), F32)
    aural = jax.random.normal(k2, (B, 128), F32)
    visual = jax.random.normal(k3, (B, 128), F32)
    text = jax.random.normal(k4, (B, 20), F32)

    params = init_params(kp)
    packed = pack_params(params)

    out = jax.block_until_ready(fusion_forward(user, aural, visual, text, packed))
    assert out.shape == (B, 3), out.shape

    ref = jax.block_until_ready(reference_forward(user, aural, visual, text, params))
    assert jnp.allclose(out, ref, atol=2e-3, rtol=2e-3), (out, ref)

    print("KERNEL_OK")
</pallas_src>

<mosaic_0001>
module attributes {stable_mosaic.version = 11 : i64} {
  func.func @fusion_kernel(%arg0: memref<2x3xf32, #tpu.memory_space<vmem>>, %arg1: memref<24x2xf32, #tpu.memory_space<vmem>>, %arg2: memref<256x2xf32, #tpu.memory_space<vmem>>, %arg3: memref<128x24xf32, #tpu.memory_space<vmem>>, %arg4: memref<128x128xf32, #tpu.memory_space<vmem>>, %arg5: memref<128x2xf32, #tpu.memory_space<vmem>>, %arg6: memref<9x8xf32, #tpu.memory_space<vmem>>, %arg7: memref<24x16xf32, #tpu.memory_space<vmem>>, %arg8: memref<48x32xf32, #tpu.memory_space<vmem>>, %arg9: memref<96x64xf32, #tpu.memory_space<vmem>>, %arg10: memref<512x128xf32, #tpu.memory_space<vmem>>, %arg11: memref<128x8xf32, #tpu.memory_space<vmem>>, %arg12: memref<16x128xf32, #tpu.memory_space<vmem>>, %arg13: memref<40x8xf32, #tpu.memory_space<vmem>>, %arg14: memref<2x3xf32, #tpu.memory_space<vmem>>, %arg15: memref<256x1xf32, #tpu.memory_space<vmem>>, %arg16: memref<128x8xf32, #tpu.memory_space<vmem>>, %arg17: memref<64x16xf32, #tpu.memory_space<vmem>>, %arg18: memref<32x32xf32, #tpu.memory_space<vmem>>, %arg19: memref<16x64xf32, #tpu.memory_space<vmem>>) attributes {dimension_semantics = [], scalar_prefetch = 0 : i64, scratch_operands = 5 : i64, tpu.core_type = #tpu.core_type<tc>} {
    %c0 = arith.constant 0 : index
    %c0_0 = arith.constant 0 : index
    %0 = vector.load %arg13[%c0, %c0_0] : memref<40x8xf32, #tpu.memory_space<vmem>>, vector<40x8xf32>
    %c0_1 = arith.constant 0 : index
    %c0_2 = arith.constant 0 : index
    %1 = vector.load %arg12[%c0_1, %c0_2] : memref<16x128xf32, #tpu.memory_space<vmem>>, vector<16x128xf32>
    %c0_3 = arith.constant 0 : index
    %c0_4 = arith.constant 0 : index
    %2 = vector.load %arg0[%c0_3, %c0_4] : memref<2x3xf32, #tpu.memory_space<vmem>>, vector<2x3xf32>
    %3 = vector.extract_strided_slice %0 {offsets = [0, 0], sizes = [3, 8], strides = [1, 1]} : vector<40x8xf32> to vector<3x8xf32>
    %cst = arith.constant dense<0.000000e+00> : vector<2x8xf32>
    %4 = tpu.matmul %2, %3, %cst {dimension_numbers = #tpu.dot_dimension_numbers<[1], [0], [0], [1], [0, 0, 1, 1], [], []>} : vector<2x3xf32>, vector<3x8xf32>, vector<2x8xf32> -> vector<2x8xf32>
    %5 = vector.extract_strided_slice %1 {offsets = [8, 0], sizes = [1, 8], strides = [1, 1]} : vector<16x128xf32> to vector<1x8xf32>
    %6 = vector.broadcast %5 : vector<1x8xf32> to vector<2x8xf32>
    %7 = arith.addf %4, %6 : vector<2x8xf32>
    %cst_5 = arith.constant 0.000000e+00 : f32
    %8 = vector.broadcast %cst_5 : f32 to vector<2x8xf32>
    %9 = arith.maximumf %7, %8 : vector<2x8xf32>
    %10 = vector.extract_strided_slice %0 {offsets = [3, 0], sizes = [8, 8], strides = [1, 1]} : vector<40x8xf32> to vector<8x8xf32>
    %cst_6 = arith.constant dense<0.000000e+00> : vector<2x8xf32>
    %11 = tpu.matmul %9, %10, %cst_6 {dimension_numbers = #tpu.dot_dimension_numbers<[1], [0], [0], [1], [0, 0, 1, 1], [], []>} : vector<2x8xf32>, vector<8x8xf32>, vector<2x8xf32> -> vector<2x8xf32>
    %12 = vector.extract_strided_slice %1 {offsets = [9, 0], sizes = [1, 8], strides = [1, 1]} : vector<16x128xf32> to vector<1x8xf32>
    %13 = vector.broadcast %12 : vector<1x8xf32> to vector<2x8xf32>
    %14 = arith.addf %11, %13 : vector<2x8xf32>
    %cst_7 = arith.constant 0.000000e+00 : f32
    %15 = vector.broadcast %cst_7 : f32 to vector<2x8xf32>
    %16 = arith.maximumf %14, %15 : vector<2x8xf32>
    %17 = vector.extract_strided_slice %0 {offsets = [11, 0], sizes = [8, 8], strides = [1, 1]} : vector<40x8xf32> to vector<8x8xf32>
    %cst_8 = arith.constant dense<0.000000e+00> : vector<2x8xf32>
    %18 = tpu.matmul %16, %17, %cst_8 {dimension_numbers = #tpu.dot_dimension_numbers<[1], [0], [0], [1], [0, 0, 1, 1], [], []>} : vector<2x8xf32>, vector<8x8xf32>, vector<2x8xf32> -> vector<2x8xf32>
    %19 = vector.extract_strided_slice %1 {offsets = [10, 0], sizes = [1, 8], strides = [1, 1]} : vector<16x128xf32> to vector<1x8xf32>
    %20 = vector.broadcast %19 : vector<1x8xf32> to vector<2x8xf32>
    %21 = arith.addf %18, %20 : vector<2x8xf32>
    %cst_9 = arith.constant 0.000000e+00 : f32
    %22 = vector.broadcast %cst_9 : f32 to vector<2x8xf32>
    %23 = arith.maximumf %21, %22 : vector<2x8xf32>
    %24 = vector.extract_strided_slice %0 {offsets = [19, 0], sizes = [8, 1], strides = [1, 1]} : vector<40x8xf32> to vector<8x1xf32>
    %cst_10 = arith.constant dense<0.000000e+00> : vector<2x1xf32>
    %25 = tpu.matmul %23, %24, %cst_10 {dimension_numbers = #tpu.dot_dimension_numbers<[1], [0], [0], [1], [0, 0, 1, 1], [], []>} : vector<2x8xf32>, vector<8x1xf32>, vector<2x1xf32> -> vector<2x1xf32>
    %26 = vector.extract_strided_slice %1 {offsets = [11, 0], sizes = [1, 1], strides = [1, 1]} : vector<16x128xf32> to vector<1x1xf32>
    %27 = vector.broadcast %26 : vector<1x1xf32> to vector<2x1xf32>
    %28 = arith.addf %25, %27 : vector<2x1xf32>
    %c0_11 = arith.constant 0 : index
    %c0_12 = arith.constant 0 : index
    %29 = vector.load %arg5[%c0_11, %c0_12] : memref<128x2xf32, #tpu.memory_space<vmem>>, vector<128x2xf32>
    %c0_13 = arith.constant 0 : index
    %c0_14 = arith.constant 0 : index
    %30 = vector.load %arg3[%c0_13, %c0_14] : memref<128x24xf32, #tpu.memory_space<vmem>>, vector<128x24xf32>
    %c0_15 = arith.constant 0 : index
    %c0_16 = arith.constant 0 : index
    %31 = vector.load %arg1[%c0_15, %c0_16] : memref<24x2xf32, #tpu.memory_space<vmem>>, vector<24x2xf32>
    %cst_17 = arith.constant dense<0.000000e+00> : vector<128x2xf32>
    %32 = tpu.matmul %30, %31, %cst_17 {dimension_numbers = #tpu.dot_dimension_numbers<[1], [0], [0], [1], [0, 0, 1, 1], [], []>} : vector<128x24xf32>, vector<24x2xf32>, vector<128x2xf32> -> vector<128x2xf32>
    %33 = vector.extract_strided_slice %29 {offsets = [0, 0], sizes = [128, 1], strides = [1, 1]} : vector<128x2xf32> to vector<128x1xf32>
    %34 = vector.broadcast %33 : vector<128x1xf32> to vector<128x2xf32>
    %35 = arith.addf %32, %34 : vector<128x2xf32>
    %cst_18 = arith.constant 0.000000e+00 : f32
    %36 = vector.broadcast %cst_18 : f32 to vector<128x2xf32>
    %37 = arith.maximumf %35, %36 : vector<128x2xf32>
    %c0_19 = arith.constant 0 : index
    %c0_20 = arith.constant 0 : index
    %38 = vector.load %arg4[%c0_19, %c0_20] : memref<128x128xf32, #tpu.memory_space<vmem>>, vector<128x128xf32>
    %cst_21 = arith.constant dense<0.000000e+00> : vector<128x2xf32>
    %39 = tpu.matmul %38, %37, %cst_21 {dimension_numbers = #tpu.dot_dimension_numbers<[1], [0], [0], [1], [0, 0, 1, 1], [], []>} : vector<128x128xf32>, vector<128x2xf32>, vector<128x2xf32> -> vector<128x2xf32>
    %40 = vector.extract_strided_slice %29 {offsets = [0, 1], sizes = [128, 1], strides = [1, 1]} : vector<128x2xf32> to vector<128x1xf32>
    %41 = vector.broadcast %40 : vector<128x1xf32> to vector<128x2xf32>
    %42 = arith.addf %39, %41 : vector<128x2xf32>
    %43 = vector.extract_strided_slice %42 {offsets = [0, 0], sizes = [128, 1], strides = [1, 1]} : vector<128x2xf32> to vector<128x1xf32>
    %c0_22 = arith.constant 0 : index
    %c0_23 = arith.constant 0 : index
    %44 = vector.load %arg15[%c0_22, %c0_23] : memref<256x1xf32, #tpu.memory_space<vmem>>, vector<128x1xf32>
    tpu.vector_store %arg15[%c0_22, %c0_23], %43 {strides = array<i32>} : memref<256x1xf32, #tpu.memory_space<vmem>>, vector<128x1xf32>,
    %45 = vector.extract_strided_slice %42 {offsets = [0, 1], sizes = [128, 1], strides = [1, 1]} : vector<128x2xf32> to vector<128x1xf32>
    %c128 = arith.constant 128 : index
    %c0_24 = arith.constant 0 : index
    %46 = vector.load %arg15[%c128, %c0_24] : memref<256x1xf32, #tpu.memory_space<vmem>>, vector<128x1xf32>
    tpu.vector_store %arg15[%c128, %c0_24], %45 {strides = array<i32>} : memref<256x1xf32, #tpu.memory_space<vmem>>, vector<128x1xf32>,
    %c0_25 = arith.constant 0 : index
    %c0_26 = arith.constant 0 : index
    %47 = tpu.strided_load %arg2[%c0_25, %c0_26] {strides = array<i32: 2, 1>} : memref<256x2xf32, #tpu.memory_space<vmem>>, vector<128x2xf32>
    %c1 = arith.constant 1 : index
    %c0_27 = arith.constant 0 : index
    %48 = tpu.strided_load %arg2[%c1, %c0_27] {strides = array<i32: 2, 1>} : memref<256x2xf32, #tpu.memory_space<vmem>>, vector<128x2xf32>
    %c0_28 = arith.constant 0 : index
    %c0_29 = arith.constant 0 : index
    %49 = tpu.strided_load %arg15[%c0_28, %c0_29] {strides = array<i32: 2, 1>} : memref<256x1xf32, #tpu.memory_space<vmem>>, vector<128x1xf32>
    %c1_30 = arith.constant 1 : index
    %c0_31 = arith.constant 0 : index
    %50 = tpu.strided_load %arg15[%c1_30, %c0_31] {strides = array<i32: 2, 1>} : memref<256x1xf32, #tpu.memory_space<vmem>>, vector<128x1xf32>
    %51 = tpu.concatenate %47, %49 in 1 : vector<128x2xf32>, vector<128x1xf32> -> vector<128x3xf32>
    %52 = tpu.concatenate %48, %50 in 1 : vector<128x2xf32>, vector<128x1xf32> -> vector<128x3xf32>
    %cst_32 = arith.constant 0.000000e+00 : f32
    %53 = vector.broadcast %cst_32 : f32 to vector<1x3xf32>
    %54 = vector.extract_strided_slice %52 {offsets = [0, 0], sizes = [127, 3], strides = [1, 1]} : vector<128x3xf32> to vector<127x3xf32>
    %55 = tpu.concatenate %53, %54 in 0 : vector<1x3xf32>, vector<127x3xf32> -> vector<128x3xf32>
    %56 = tpu.iota {dimensions = array<i32: 0>} : vector<128x1xi32>
    %c64_i32 = arith.constant 64 : i32
    %c0_i32 = arith.constant 0 : i32
    %57 = arith.cmpi eq, %c64_i32, %c0_i32 : i32
    %c1_i32 = arith.constant 1 : i32
    %58 = arith.select %57, %c1_i32, %c64_i32 : i32
    %59 = vector.broadcast %58 : i32 to vector<128x1xi32>
    %60 = arith.remsi %56, %59 : vector<128x1xi32>
    %c0_i32_33 = arith.constant 0 : i32
    %61 = vector.broadcast %c0_i32_33 : i32 to vector<128x1xi32>
    %62 = arith.cmpi ne, %60, %61 : vector<128x1xi32>
    %c0_i32_34 = arith.constant 0 : i32
    %63 = vector.broadcast %c0_i32_34 : i32 to vector<128x1xi32>
    %64 = arith.cmpi slt, %60, %63 : vector<128x1xi32>
    %c0_i32_35 = arith.constant 0 : i32
    %65 = arith.cmpi slt, %58, %c0_i32_35 : i32
    %66 = vector.broadcast %65 : i1 to vector<128x1xi1>
    %67 = vector.broadcast %66 : vector<128x1xi1> to vector<128x1xi1>
    %68 = arith.xori %64, %67 : vector<128x1xi1>
    %69 = arith.andi %68, %62 : vector<128x1xi1>
    %70 = vector.broadcast %58 : i32 to vector<128x1xi32>
    %71 = arith.addi %60, %70 : vector<128x1xi32>
    %72 = arith.select %69, %71, %60 : vector<128x1xi1>, vector<128x1xi32>
    %c0_i32_36 = arith.constant 0 : i32
    %73 = vector.broadcast %c0_i32_36 : i32 to vector<128x1xi32>
    %74 = arith.cmpi eq, %72, %73 : vector<128x1xi32>
    %cst_37 = arith.constant 0.000000e+00 : f32
    %75 = vector.shape_cast %74 : vector<128x1xi1> to vector<128x1xi1>
    %76 = vector.broadcast %75 : vector<128x1xi1> to vector<128x3xi1>
    %77 = vector.broadcast %cst_37 : f32 to vector<128x3xf32>
    %78 = arith.select %76, %77, %55 : vector<128x3xi1>, vector<128x3xf32>
    %79 = tpu.concatenate %78, %51, %52 in 1 : vector<128x3xf32>, vector<128x3xf32>, vector<128x3xf32> -> vector<128x9xf32>
    %c0_38 = arith.constant 0 : index
    %c0_39 = arith.constant 0 : index
    %80 = vector.load %arg6[%c0_38, %c0_39] : memref<9x8xf32, #tpu.memory_space<vmem>>, vector<9x8xf32>
    %cst_40 = arith.constant dense<0.000000e+00> : vector<128x8xf32>
    %81 = tpu.matmul %79, %80, %cst_40 {dimension_numbers = #tpu.dot_dimension_numbers<[1], [0], [0], [1], [0, 0, 1, 1], [], []>} : vector<128x9xf32>, vector<9x8xf32>, vector<128x8xf32> -> vector<128x8xf32>
    %82 = vector.extract_strided_slice %1 {offsets = [0, 0], sizes = [1, 8], strides = [1, 1]} : vector<16x128xf32> to vector<1x8xf32>
    %83 = vector.broadcast %82 : vector<1x8xf32> to vector<128x8xf32>
    %84 = arith.addf %81, %83 : vector<128x8xf32>
    %cst_41 = arith.constant 0.000000e+00 : f32
    %85 = vector.broadcast %cst_41 : f32 to vector<128x8xf32>
    %86 = arith.maximumf %84, %85 : vector<128x8xf32>
    %c0_42 = arith.constant 0 : index
    %c0_43 = arith.constant 0 : index
    %87 = vector.load %arg16[%c0_42, %c0_43] : memref<128x8xf32, #tpu.memory_space<vmem>>, vector<128x8xf32>
    tpu.vector_store %arg16[%c0_42, %c0_43], %86 {strides = array<i32>} : memref<128x8xf32, #tpu.memory_space<vmem>>, vector<128x8xf32>,
    %88 = vector.extract_strided_slice %1 {offsets = [1, 0], sizes = [1, 16], strides = [1, 1]} : vector<16x128xf32> to vector<1x16xf32>
    %c0_44 = arith.constant 0 : index
    %c0_45 = arith.constant 0 : index
    %89 = tpu.strided_load %arg16[%c0_44, %c0_45] {strides = array<i32: 2, 1>} : memref<128x8xf32, #tpu.memory_space<vmem>>, vector<64x8xf32>
    %c1_46 = arith.constant 1 : index
    %c0_47 = arith.constant 0 : index
    %90 = tpu.strided_load %arg16[%c1_46, %c0_47] {strides = array<i32: 2, 1>} : memref<128x8xf32, #tpu.memory_space<vmem>>, vector<64x8xf32>
    %cst_48 = arith.constant 0.000000e+00 : f32
    %91 = vector.broadcast %cst_48 : f32 to vector<1x8xf32>
    %92 = vector.extract_strided_slice %90 {offsets = [0, 0], sizes = [63, 8], strides = [1, 1]} : vector<64x8xf32> to vector<63x8xf32>
    %93 = tpu.concatenate %91, %92 in 0 : vector<1x8xf32>, vector<63x8xf32> -> vector<64x8xf32>
    %94 = tpu.iota {dimensions = array<i32: 0>} : vector<64x1xi32>
    %c32_i32 = arith.constant 32 : i32
    %c0_i32_49 = arith.constant 0 : i32
    %95 = arith.cmpi eq, %c32_i32, %c0_i32_49 : i32
    %c1_i32_50 = arith.constant 1 : i32
    %96 = arith.select %95, %c1_i32_50, %c32_i32 : i32
    %97 = vector.broadcast %96 : i32 to vector<64x1xi32>
    %98 = arith.remsi %94, %97 : vector<64x1xi32>
    %c0_i32_51 = arith.constant 0 : i32
    %99 = vector.broadcast %c0_i32_51 : i32 to vector<64x1xi32>
    %100 = arith.cmpi ne, %98, %99 : vector<64x1xi32>
    %c0_i32_52 = arith.constant 0 : i32
    %101 = vector.broadcast %c0_i32_52 : i32 to vector<64x1xi32>
    %102 = arith.cmpi slt, %98, %101 : vector<64x1xi32>
    %c0_i32_53 = arith.constant 0 : i32
    %103 = arith.cmpi slt, %96, %c0_i32_53 : i32
    %104 = vector.broadcast %103 : i1 to vector<64x1xi1>
    %105 = vector.broadcast %104 : vector<64x1xi1> to vector<64x1xi1>
    %106 = arith.xori %102, %105 : vector<64x1xi1>
    %107 = arith.andi %106, %100 : vector<64x1xi1>
    %108 = vector.broadcast %96 : i32 to vector<64x1xi32>
    %109 = arith.addi %98, %108 : vector<64x1xi32>
    %110 = arith.select %107, %109, %98 : vector<64x1xi1>, vector<64x1xi32>
    %c0_i32_54 = arith.constant 0 : i32
    %111 = vector.broadcast %c0_i32_54 : i32 to vector<64x1xi32>
    %112 = arith.cmpi eq, %110, %111 : vector<64x1xi32>
    %cst_55 = arith.constant 0.000000e+00 : f32
    %113 = vector.shape_cast %112 : vector<64x1xi1> to vector<64x1xi1>
    %114 = vector.broadcast %113 : vector<64x1xi1> to vector<64x8xi1>
    %115 = vector.broadcast %cst_55 : f32 to vector<64x8xf32>
    %116 = arith.select %114, %115, %93 : vector<64x8xi1>, vector<64x8xf32>
    %117 = tpu.concatenate %116, %89, %90 in 1 : vector<64x8xf32>, vector<64x8xf32>, vector<64x8xf32> -> vector<64x24xf32>
    %c0_56 = arith.constant 0 : index
    %c0_57 = arith.constant 0 : index
    %118 = vector.load %arg7[%c0_56, %c0_57] : memref<24x16xf32, #tpu.memory_space<vmem>>, vector<24x16xf32>
    %cst_58 = arith.constant dense<0.000000e+00> : vector<64x16xf32>
    %119 = tpu.matmul %117, %118, %cst_58 {dimension_numbers = #tpu.dot_dimension_numbers<[1], [0], [0], [1], [0, 0, 1, 1], [], []>} : vector<64x24xf32>, vector<24x16xf32>, vector<64x16xf32> -> vector<64x16xf32>
    %120 = vector.broadcast %88 : vector<1x16xf32> to vector<64x16xf32>
    %121 = arith.addf %119, %120 : vector<64x16xf32>
    %cst_59 = arith.constant 0.000000e+00 : f32
    %122 = vector.broadcast %cst_59 : f32 to vector<64x16xf32>
    %123 = arith.maximumf %121, %122 : vector<64x16xf32>
    %c0_60 = arith.constant 0 : index
    %c0_61 = arith.constant 0 : index
    %124 = vector.load %arg17[%c0_60, %c0_61] : memref<64x16xf32, #tpu.memory_space<vmem>>, vector<64x16xf32>
    tpu.vector_store %arg17[%c0_60, %c0_61], %123 {strides = array<i32>} : memref<64x16xf32, #tpu.memory_space<vmem>>, vector<64x16xf32>,
    %125 = vector.extract_strided_slice %1 {offsets = [2, 0], sizes = [1, 32], strides = [1, 1]} : vector<16x128xf32> to vector<1x32xf32>
    %c0_62 = arith.constant 0 : index
    %c0_63 = arith.constant 0 : index
    %126 = tpu.strided_load %arg17[%c0_62, %c0_63] {strides = array<i32: 2, 1>} : memref<64x16xf32, #tpu.memory_space<vmem>>, vector<32x16xf32>
    %c1_64 = arith.constant 1 : index
    %c0_65 = arith.constant 0 : index
    %127 = tpu.strided_load %arg17[%c1_64, %c0_65] {strides = array<i32: 2, 1>} : memref<64x16xf32, #tpu.memory_space<vmem>>, vector<32x16xf32>
    %cst_66 = arith.constant 0.000000e+00 : f32
    %128 = vector.broadcast %cst_66 : f32 to vector<1x16xf32>
    %129 = vector.extract_strided_slice %127 {offsets = [0, 0], sizes = [31, 16], strides = [1, 1]} : vector<32x16xf32> to vector<31x16xf32>
    %130 = tpu.concatenate %128, %129 in 0 : vector<1x16xf32>, vector<31x16xf32> -> vector<32x16xf32>
    %131 = tpu.iota {dimensions = array<i32: 0>} : vector<32x1xi32>
    %c16_i32 = arith.constant 16 : i32
    %c0_i32_67 = arith.constant 0 : i32
    %132 = arith.cmpi eq, %c16_i32, %c0_i32_67 : i32
    %c1_i32_68 = arith.constant 1 : i32
    %133 = arith.select %132, %c1_i32_68, %c16_i32 : i32
    %134 = vector.broadcast %133 : i32 to vector<32x1xi32>
    %135 = arith.remsi %131, %134 : vector<32x1xi32>
    %c0_i32_69 = arith.constant 0 : i32
    %136 = vector.broadcast %c0_i32_69 : i32 to vector<32x1xi32>
    %137 = arith.cmpi ne, %135, %136 : vector<32x1xi32>
    %c0_i32_70 = arith.constant 0 : i32
    %138 = vector.broadcast %c0_i32_70 : i32 to vector<32x1xi32>
    %139 = arith.cmpi slt, %135, %138 : vector<32x1xi32>
    %c0_i32_71 = arith.constant 0 : i32
    %140 = arith.cmpi slt, %133, %c0_i32_71 : i32
    %141 = vector.broadcast %140 : i1 to vector<32x1xi1>
    %142 = vector.broadcast %141 : vector<32x1xi1> to vector<32x1xi1>
    %143 = arith.xori %139, %142 : vector<32x1xi1>
    %144 = arith.andi %143, %137 : vector<32x1xi1>
    %145 = vector.broadcast %133 : i32 to vector<32x1xi32>
    %146 = arith.addi %135, %145 : vector<32x1xi32>
    %147 = arith.select %144, %146, %135 : vector<32x1xi1>, vector<32x1xi32>
    %c0_i32_72 = arith.constant 0 : i32
    %148 = vector.broadcast %c0_i32_72 : i32 to vector<32x1xi32>
    %149 = arith.cmpi eq, %147, %148 : vector<32x1xi32>
    %cst_73 = arith.constant 0.000000e+00 : f32
    %150 = vector.shape_cast %149 : vector<32x1xi1> to vector<32x1xi1>
    %151 = vector.broadcast %150 : vector<32x1xi1> to vector<32x16xi1>
    %152 = vector.broadcast %cst_73 : f32 to vector<32x16xf32>
    %153 = arith.select %151, %152, %130 : vector<32x16xi1>, vector<32x16xf32>
    %154 = tpu.concatenate %153, %126, %127 in 1 : vector<32x16xf32>, vector<32x16xf32>, vector<32x16xf32> -> vector<32x48xf32>
    %c0_74 = arith.constant 0 : index
    %c0_75 = arith.constant 0 : index
    %155 = vector.load %arg8[%c0_74, %c0_75] : memref<48x32xf32, #tpu.memory_space<vmem>>, vector<48x32xf32>
    %cst_76 = arith.constant dense<0.000000e+00> : vector<32x32xf32>
    %156 = tpu.matmul %154, %155, %cst_76 {dimension_numbers = #tpu.dot_dimension_numbers<[1], [0], [0], [1], [0, 0, 1, 1], [], []>} : vector<32x48xf32>, vector<48x32xf32>, vector<32x32xf32> -> vector<32x32xf32>
    %157 = vector.broadcast %125 : vector<1x32xf32> to vector<32x32xf32>
    %158 = arith.addf %156, %157 : vector<32x32xf32>
    %cst_77 = arith.constant 0.000000e+00 : f32
    %159 = vector.broadcast %cst_77 : f32 to vector<32x32xf32>
    %160 = arith.maximumf %158, %159 : vector<32x32xf32>
    %c0_78 = arith.constant 0 : index
    %c0_79 = arith.constant 0 : index
    %161 = vector.load %arg18[%c0_78, %c0_79] : memref<32x32xf32, #tpu.memory_space<vmem>>, vector<32x32xf32>
    tpu.vector_store %arg18[%c0_78, %c0_79], %160 {strides = array<i32>} : memref<32x32xf32, #tpu.memory_space<vmem>>, vector<32x32xf32>,
    %162 = vector.extract_strided_slice %1 {offsets = [3, 0], sizes = [1, 64], strides = [1, 1]} : vector<16x128xf32> to vector<1x64xf32>
    %c0_80 = arith.constant 0 : index
    %c0_81 = arith.constant 0 : index
    %163 = tpu.strided_load %arg18[%c0_80, %c0_81] {strides = array<i32: 2, 1>} : memref<32x32xf32, #tpu.memory_space<vmem>>, vector<16x32xf32>
    %c1_82 = arith.constant 1 : index
    %c0_83 = arith.constant 0 : index
    %164 = tpu.strided_load %arg18[%c1_82, %c0_83] {strides = array<i32: 2, 1>} : memref<32x32xf32, #tpu.memory_space<vmem>>, vector<16x32xf32>
    %cst_84 = arith.constant 0.000000e+00 : f32
    %165 = vector.broadcast %cst_84 : f32 to vector<1x32xf32>
    %166 = vector.extract_strided_slice %164 {offsets = [0, 0], sizes = [15, 32], strides = [1, 1]} : vector<16x32xf32> to vector<15x32xf32>
    %167 = tpu.concatenate %165, %166 in 0 : vector<1x32xf32>, vector<15x32xf32> -> vector<16x32xf32>
    %168 = tpu.iota {dimensions = array<i32: 0>} : vector<16x1xi32>
    %c8_i32 = arith.constant 8 : i32
    %c0_i32_85 = arith.constant 0 : i32
    %169 = arith.cmpi eq, %c8_i32, %c0_i32_85 : i32
    %c1_i32_86 = arith.constant 1 : i32
    %170 = arith.select %169, %c1_i32_86, %c8_i32 : i32
    %171 = vector.broadcast %170 : i32 to vector<16x1xi32>
    %172 = arith.remsi %168, %171 : vector<16x1xi32>
    %c0_i32_87 = arith.constant 0 : i32
    %173 = vector.broadcast %c0_i32_87 : i32 to vector<16x1xi32>
    %174 = arith.cmpi ne, %172, %173 : vector<16x1xi32>
    %c0_i32_88 = arith.constant 0 : i32
    %175 = vector.broadcast %c0_i32_88 : i32 to vector<16x1xi32>
    %176 = arith.cmpi slt, %172, %175 : vector<16x1xi32>
    %c0_i32_89 = arith.constant 0 : i32
    %177 = arith.cmpi slt, %170, %c0_i32_89 : i32
    %178 = vector.broadcast %177 : i1 to vector<16x1xi1>
    %179 = vector.broadcast %178 : vector<16x1xi1> to vector<16x1xi1>
    %180 = arith.xori %176, %179 : vector<16x1xi1>
    %181 = arith.andi %180, %174 : vector<16x1xi1>
    %182 = vector.broadcast %170 : i32 to vector<16x1xi32>
    %183 = arith.addi %172, %182 : vector<16x1xi32>
    %184 = arith.select %181, %183, %172 : vector<16x1xi1>, vector<16x1xi32>
    %c0_i32_90 = arith.constant 0 : i32
    %185 = vector.broadcast %c0_i32_90 : i32 to vector<16x1xi32>
    %186 = arith.cmpi eq, %184, %185 : vector<16x1xi32>
    %cst_91 = arith.constant 0.000000e+00 : f32
    %187 = vector.shape_cast %186 : vector<16x1xi1> to vector<16x1xi1>
    %188 = vector.broadcast %187 : vector<16x1xi1> to vector<16x32xi1>
    %189 = vector.broadcast %cst_91 : f32 to vector<16x32xf32>
    %190 = arith.select %188, %189, %167 : vector<16x32xi1>, vector<16x32xf32>
    %191 = tpu.concatenate %190, %163, %164 in 1 : vector<16x32xf32>, vector<16x32xf32>, vector<16x32xf32> -> vector<16x96xf32>
    %c0_92 = arith.constant 0 : index
    %c0_93 = arith.constant 0 : index
    %192 = vector.load %arg9[%c0_92, %c0_93] : memref<96x64xf32, #tpu.memory_space<vmem>>, vector<96x64xf32>
    %cst_94 = arith.constant dense<0.000000e+00> : vector<16x64xf32>
    %193 = tpu.matmul %191, %192, %cst_94 {dimension_numbers = #tpu.dot_dimension_numbers<[1], [0], [0], [1], [0, 0, 1, 1], [], []>} : vector<16x96xf32>, vector<96x64xf32>, vector<16x64xf32> -> vector<16x64xf32>
    %194 = vector.broadcast %162 : vector<1x64xf32> to vector<16x64xf32>
    %195 = arith.addf %193, %194 : vector<16x64xf32>
    %cst_95 = arith.constant 0.000000e+00 : f32
    %196 = vector.broadcast %cst_95 : f32 to vector<16x64xf32>
    %197 = arith.maximumf %195, %196 : vector<16x64xf32>
    %c0_96 = arith.constant 0 : index
    %c0_97 = arith.constant 0 : index
    %198 = vector.load %arg19[%c0_96, %c0_97] : memref<16x64xf32, #tpu.memory_space<vmem>>, vector<16x64xf32>
    tpu.vector_store %arg19[%c0_96, %c0_97], %197 {strides = array<i32>} : memref<16x64xf32, #tpu.memory_space<vmem>>, vector<16x64xf32>,
    %c0_98 = arith.constant 0 : index
    %c0_99 = arith.constant 0 : index
    %199 = tpu.strided_load %arg19[%c0_98, %c0_99] {strides = array<i32: 8, 1>} : memref<16x64xf32, #tpu.memory_space<vmem>>, vector<2x64xf32>
    %c1_100 = arith.constant 1 : index
    %c0_101 = arith.constant 0 : index
    %200 = tpu.strided_load %arg19[%c1_100, %c0_101] {strides = array<i32: 8, 1>} : memref<16x64xf32, #tpu.memory_space<vmem>>, vector<2x64xf32>
    %c2 = arith.constant 2 : index
    %c0_102 = arith.constant 0 : index
    %201 = tpu.strided_load %arg19[%c2, %c0_102] {strides = array<i32: 8, 1>} : memref<16x64xf32, #tpu.memory_space<vmem>>, vector<2x64xf32>
    %c3 = arith.constant 3 : index
    %c0_103 = arith.constant 0 : index
    %202 = tpu.strided_load %arg19[%c3, %c0_103] {strides = array<i32: 8, 1>} : memref<16x64xf32, #tpu.memory_space<vmem>>, vector<2x64xf32>
    %c4 = arith.constant 4 : index
    %c0_104 = arith.constant 0 : index
    %203 = tpu.strided_load %arg19[%c4, %c0_104] {strides = array<i32: 8, 1>} : memref<16x64xf32, #tpu.memory_space<vmem>>, vector<2x64xf32>
    %c5 = arith.constant 5 : index
    %c0_105 = arith.constant 0 : index
    %204 = tpu.strided_load %arg19[%c5, %c0_105] {strides = array<i32: 8, 1>} : memref<16x64xf32, #tpu.memory_space<vmem>>, vector<2x64xf32>
    %c6 = arith.constant 6 : index
    %c0_106 = arith.constant 0 : index
    %205 = tpu.strided_load %arg19[%c6, %c0_106] {strides = array<i32: 8, 1>} : memref<16x64xf32, #tpu.memory_space<vmem>>, vector<2x64xf32>
    %c7 = arith.constant 7 : index
    %c0_107 = arith.constant 0 : index
    %206 = tpu.strided_load %arg19[%c7, %c0_107] {strides = array<i32: 8, 1>} : memref<16x64xf32, #tpu.memory_space<vmem>>, vector<2x64xf32>
    %207 = tpu.concatenate %199, %200, %201, %202, %203, %204, %205, %206 in 1 : vector<2x64xf32>, vector<2x64xf32>, vector<2x64xf32>, vector<2x64xf32>, vector<2x64xf32>, vector<2x64xf32>, vector<2x64xf32>, vector<2x64xf32> -> vector<2x512xf32>
    %c0_108 = arith.constant 0 : index
    %c0_109 = arith.constant 0 : index
    %208 = vector.load %arg10[%c0_108, %c0_109] : memref<512x128xf32, #tpu.memory_space<vmem>>, vector<512x128xf32>
    %cst_110 = arith.constant dense<0.000000e+00> : vector<2x128xf32>
    %209 = tpu.matmul %207, %208, %cst_110 {dimension_numbers = #tpu.dot_dimension_numbers<[1], [0], [0], [1], [0, 0, 1, 1], [], []>} : vector<2x512xf32>, vector<512x128xf32>, vector<2x128xf32> -> vector<2x128xf32>
    %210 = vector.extract_strided_slice %1 {offsets = [4, 0], sizes = [1, 128], strides = [1, 1]} : vector<16x128xf32> to vector<1x128xf32>
    %211 = vector.broadcast %210 : vector<1x128xf32> to vector<2x128xf32>
    %212 = arith.addf %209, %211 : vector<2x128xf32>
    %cst_111 = arith.constant 0.000000e+00 : f32
    %213 = vector.broadcast %cst_111 : f32 to vector<2x128xf32>
    %214 = arith.maximumf %212, %213 : vector<2x128xf32>
    %c0_112 = arith.constant 0 : index
    %c0_113 = arith.constant 0 : index
    %215 = vector.load %arg11[%c0_112, %c0_113] : memref<128x8xf32, #tpu.memory_space<vmem>>, vector<128x8xf32>
    %cst_114 = arith.constant dense<0.000000e+00> : vector<2x8xf32>
    %216 = tpu.matmul %214, %215, %cst_114 {dimension_numbers = #tpu.dot_dimension_numbers<[1], [0], [0], [1], [0, 0, 1, 1], [], []>} : vector<2x128xf32>, vector<128x8xf32>, vector<2x8xf32> -> vector<2x8xf32>
    %217 = vector.extract_strided_slice %1 {offsets = [5, 0], sizes = [1, 8], strides = [1, 1]} : vector<16x128xf32> to vector<1x8xf32>
    %218 = vector.broadcast %217 : vector<1x8xf32> to vector<2x8xf32>
    %219 = arith.addf %216, %218 : vector<2x8xf32>
    %220 = vector.extract_strided_slice %0 {offsets = [27, 0], sizes = [8, 3], strides = [1, 1]} : vector<40x8xf32> to vector<8x3xf32>
    %cst_115 = arith.constant dense<0.000000e+00> : vector<2x3xf32>
    %221 = tpu.matmul %219, %220, %cst_115 {dimension_numbers = #tpu.dot_dimension_numbers<[1], [0], [0], [1], [0, 0, 1, 1], [], []>} : vector<2x8xf32>, vector<8x3xf32>, vector<2x3xf32> -> vector<2x3xf32>
    %222 = vector.extract_strided_slice %0 {offsets = [35, 0], sizes = [1, 3], strides = [1, 1]} : vector<40x8xf32> to vector<1x3xf32>
    %223 = vector.broadcast %28 : vector<2x1xf32> to vector<2x3xf32>
    %224 = vector.broadcast %222 : vector<1x3xf32> to vector<2x3xf32>
    %225 = arith.mulf %223, %224 : vector<2x3xf32>
    %226 = arith.addf %221, %225 : vector<2x3xf32>
    %227 = vector.extract_strided_slice %1 {offsets = [6, 0], sizes = [1, 3], strides = [1, 1]} : vector<16x128xf32> to vector<1x3xf32>
    %228 = vector.broadcast %227 : vector<1x3xf32> to vector<2x3xf32>
    %229 = arith.addf %226, %228 : vector<2x3xf32>
    %c0_116 = arith.constant 0 : index
    %c0_117 = arith.constant 0 : index
    %230 = vector.load %arg14[%c0_116, %c0_117] : memref<2x3xf32, #tpu.memory_space<vmem>>, vector<2x3xf32>
    tpu.vector_store %arg14[%c0_116, %c0_117], %229 {strides = array<i32>} : memref<2x3xf32, #tpu.memory_space<vmem>>, vector<2x3xf32>,
    return
  }
}

</mosaic_0001>

<bundles_post_ra>
// kernel: tpu_custom_call.1
= control target key start
LH: loop header
LB: loop body
LE: loop exit
PB: predicated region body
PF: predicated region fallthrough
CT: control target
= control target key end

     0   :  { %vm64_vm0 = vcmask 1042432   ;;  %v4062_v2 = vmov 0.0   ;;  %vm4063_vm1 = vmmov 0   ;;  %vm60_vm2 = vcmask 23552   ;;  %s5358_s0 = inlined_call_operand.vmem [shape: f32[2,3], index: 0, kind: input, shape index: {}]   ;;  %s5359_s1 = inlined_call_operand.vmem [shape: f32[24,2], index: 1, kind: input, shape index: {}]   ;;  %s5360_s2 = inlined_call_operand.vmem [shape: f32[256,2], index: 2, kind: input, shape index: {}]   ;;  %s5361_s3 = inlined_call_operand.vmem [shape: f32[128,24], index: 3, kind: input, shape index: {}]   ;;  %s5362_s4 = inlined_call_operand.vmem [shape: f32[128,128], index: 4, kind: input, shape index: {}]   ;;  %s5363_s5 = inlined_call_operand.vmem [shape: f32[128,2], index: 5, kind: input, shape index: {}]   ;;  %s5364_s6 = inlined_call_operand.vmem [shape: f32[9,8], index: 6, kind: input, shape index: {}]   ;;  %s5365_s7 = inlined_call_operand.vmem [shape: f32[24,16], index: 7, kind: input, shape index: {}]   ;;  %s5366_s8 = inlined_call_operand.vmem [shape: f32[48,32], index: 8, kind: input, shape index: {}]   ;;  %s5367_s9 = inlined_call_operand.vmem [shape: f32[96,64], index: 9, kind: input, shape index: {}]   ;;  %s5368_s10 = inlined_call_operand.vmem [shape: f32[512,128], index: 10, kind: input, shape index: {}]   ;;  %s5369_s11 = inlined_call_operand.vmem [shape: f32[128,8], index: 11, kind: input, shape index: {}]   ;;  %s5370_s12 = inlined_call_operand.vmem [shape: f32[16,128], index: 12, kind: input, shape index: {}]   ;;  %s5371_s13 = inlined_call_operand.vmem [shape: f32[40,8], index: 13, kind: input, shape index: {}]   ;;  %s5372_s14 = inlined_call_operand.hbm [shape: f32[2,3], index: 14, kind: output, shape index: {}]  }
   0x1   :  { %v48_v0 = vld [vmem:[%s5371_s13] sm:$0xff]  ;;  %3598 = vmatprep.subr.mxu1 %v4062_v2  ;;  %3600 = vmatprep.mubr.msk.f32.mxu1 %vm4063_vm1, %v4062_v2 }
   0x2   :  { %v55_v1 = vld [vmem:[%s5358_s0] sm:$0x3] }
   0x3   :  { %19 = vsyncpa [#allocation8], 0  ;;  %3599 = vmatpush3.msk.msra.mxu1 %vm64_vm0, %v48_v0  ;;  %3608 = vmatprep.subr.mxu0 %v4062_v2  ;;  %v145_v3 = vrot.slane %v48_v0, 3  ;;  %v49_v4 = vld [vmem:[%s5371_s13 + $0x8] sm:$0xff]  ;;  %vm144_vm3 = vcmask 1044480   ;;  %v56_v7 = vlaneseq  ;;  %vm149_vm4 = vcmask 64512  }
   0x4   :  { %3601 = vmatmul.mubr.msk.f32.vlgmr.msra.gmra.mrb[0].mxu1 %vm60_vm2, %v55_v1  ;;  %3603 = vmatprep.subr.mxu1 %v4062_v2  ;;  %v146_v5 = vrot.slane %v49_v4, 3  ;;  %v4179_v10 = vld [vmem:[%s5370_s12 + $0x8] sm:$0xff]  ;;  %v4190_v16 = vld [vmem:[%s5371_s13 + $0x10] sm:$0xff]  ;;  %v419_v18 = vld [vmem:[%s5359_s1] sm:$0xff]  ;;  %v4064_v24 = vmov 0   ;;  %vm502_vm5 = vcmask 195584  }
   0x5   :  { %3605 = vmatprep.mubr.msk.f32.mxu1 %vm4063_vm1, %v4062_v2  ;;  %3610 = vmatprep.mubr.msk.f32.mxu0 %vm4063_vm1, %v4062_v2  ;;  %v4173_v8 = vshrl.u32 %v56_v7, 7  ;;  %v229_v17 = vrot.slane %v4190_v16, 3  ;;  %v420_v19 = vld [vmem:[%s5359_s1 + $0x8] sm:$0xff]  ;;  %v4205_v22 = vld [vmem:[%s5363_s5] sm:$0xff]  ;;  %v4210_v23 = vld [vmem:[%s5363_s5 + $0x10] sm:$0xff]  ;;  %v4065_v1 = vmov 1  }
   0x6   :  { %v147_v6 = vsel %vm144_vm3, %v145_v3, %v146_v5  ;;  %v3835_v21 = vpack.c.bf16 %v420_v19, %v419_v18  ;;  %4020 = vset.pattern.permute.xlu0 %v4064_v24  ;;  %4021 = vset.pattern.permute.xlu1 %v4064_v24  ;;  %v4219_v25 = vld [vmem:[%s5363_s5 + $0x8] sm:$0xff]  ;;  %v4224_v26 = vld [vmem:[%s5363_s5 + $0x18] sm:$0xff]  ;;  %v4231_v27 = vld [vmem:[%s5363_s5 + $0x20] sm:$0xff]  ;;  %vm937_vm6 = vcmask 7168   ;;  %s4066_s15 = smov 127   ;;  %vm1224_vm7 = vcmask 15360  }
   0x7   :  { %3604 = vmatpush3.msra.mxu1 %v147_v6  ;;  %v58_v9 = vsub.s32 0, %v4173_v8  ;;  %v230_v20 = vsel %vm144_vm3, %v146_v5, %v229_v17  ;;  %424 = vperm.xlu0 %4020, %v4205_v22   ;;  %v4236_v28 = vld [vmem:[%s5363_s5 + $0x28] sm:$0xff]  ;;  %v4243_v29 = vld [vmem:[%s5363_s5 + $0x30] sm:$0xff]  ;;  %v4248_v30 = vld [vmem:[%s5363_s5 + $0x38] sm:$0xff]  ;;  %v141_v39 = vsub.s32 1, %v4173_v8  ;;  %v226_v5 = vsub.s32 2, %v4173_v8 }
   0x8   :  { %3613 = vmatprep.subr.mxu1 %v4062_v2  ;;  %3609 = vmatpush3.msra.mxu0 %v230_v20  ;;  %v4255_v31 = vld [vmem:[%s5363_s5 + $0x40] sm:$0xff]  ;;  %v4260_v32 = vld [vmem:[%s5363_s5 + $0x48] sm:$0xff]  ;;  %v4267_v33 = vld [vmem:[%s5363_s5 + $0x50] sm:$0xff]  ;;  %s4068_s19 = smov 3   ;;  %vm1337_vm8 = vcmask 1040384   ;;  %vm4069_vm9 = vmmov 1  }
   0x9   :  { %v59_v11 = vrot.slane %v4179_v10, %v58_v9  ;;  %3836 = vmatprep.subr.bf16.mxu0 %v3835_v21  ;;  %434 = vperm.xlu1 %4021, %v4210_v23   ;;  %v4272_v34 = vld [vmem:[%s5363_s5 + $0x58] sm:$0xff]  ;;  %v4279_v35 = vld [vmem:[%s5363_s5 + $0x60] sm:$0xff]  ;;  %v4284_v36 = vld [vmem:[%s5363_s5 + $0x68] sm:$0xff]  ;;  %v142_v40 = vrot.slane %v4179_v10, %v141_v39  ;;  %v227_v6 = vrot.slane %v4179_v10, %v226_v5  ;;  %s4070_s20 = smov 6   ;;  %vm1787_vm12 = vcmask 48128   ;;  %s4071_s27 = smov 8  }
   0xa   :  { %v4291_v37 = vld [vmem:[%s5363_s5 + $0x70] sm:$0xff]  ;;  %v4296_v38 = vld [vmem:[%s5363_s5 + $0x78] sm:$0xff]  ;;  %v403_v45 = vld [vmem:[%s5361_s3] sm:$0xff]  ;;  %vm1810_vm13 = vcmask 72704   ;;  %vm2294_vm0 = vcmask 130048   ;;  %s4074_s17 = smov 64  }
   0xb   :  { %429 = vperm.xlu0 %4020, %v4219_v25   ;;  %v421_v46 = vld [vmem:[%s5359_s1 + $0x10] sm:$0xff]  ;;  %v404_v47 = vld [vmem:[%s5361_s3 + $0x8] sm:$0xff]  ;;  %v406_v49 = vld [vmem:[%s5361_s3 + $0x18] sm:$0xff] }
   0xc   :  { %v405_v48 = vld [vmem:[%s5361_s3 + $0x10] sm:$0xff]  ;;  %v407_v50 = vld [vmem:[%s5361_s3 + $0x20] sm:$0xff]  ;;  %v408_v51 = vld [vmem:[%s5361_s3 + $0x28] sm:$0xff] }
   0xd   :  { %439 = vperm.xlu1 %4021, %v4224_v26   ;;  %v409_v52 = vld [vmem:[%s5361_s3 + $0x30] sm:$0xff]  ;;  %v410_v53 = vld [vmem:[%s5361_s3 + $0x38] sm:$0xff]  ;;  %v411_v54 = vld [vmem:[%s5361_s3 + $0x40] sm:$0xff] }
   0xe   :  { %v412_v55 = vld [vmem:[%s5361_s3 + $0x48] sm:$0xff]  ;;  %v413_v56 = vld [vmem:[%s5361_s3 + $0x50] sm:$0xff]  ;;  %v414_v57 = vld [vmem:[%s5361_s3 + $0x58] sm:$0xff] }
   0xf   :  { %444 = vperm.xlu0 %4020, %v4231_v27   ;;  %v415_v58 = vld [vmem:[%s5361_s3 + $0x60] sm:$0xff]  ;;  %v416_v59 = vld [vmem:[%s5361_s3 + $0x68] sm:$0xff]  ;;  %v417_v60 = vld [vmem:[%s5361_s3 + $0x70] sm:$0xff] }
  0x10   :  { %v418_v61 = vld [vmem:[%s5361_s3 + $0x78] sm:$0xff]  ;;  %v712_v16 = vld [vmem:[%s5362_s4] sm:$0xff]  ;;  %vm3872_vm10 = vmpackc.low %vm1337_vm8, %vm4069_vm9 }
  0x11   :  { %449 = vperm.xlu1 %4021, %v4236_v28   ;;  %v4375_v62 = vld [vmem:[%s5371_s13 + $0x18] sm:$0xff] }
  0x12   :  { %v311_v63 = vrot.slane %v4375_v62, 3 }
  0x13   :  { %454 = vperm.xlu0 %4020, %v4243_v29  }
  0x14   :  { %v312_v0 = vsel %vm144_vm3, %v229_v17, %v311_v63 }
  0x15   :  { %459 = vperm.xlu1 %4021, %v4248_v30  }
  0x17   :  { %464 = vperm.xlu0 %4020, %v4255_v31  }
  0x19   :  { %469 = vperm.xlu1 %4021, %v4260_v32  }
  0x1b   :  { %474 = vperm.xlu0 %4020, %v4267_v33  }
  0x1d   :  { %479 = vperm.xlu1 %4021, %v4272_v34  }
  0x1f   :  { %484 = vperm.xlu0 %4020, %v4279_v35  }
  0x21   :  { %489 = vperm.xlu1 %4021, %v4284_v36  }
  0x23   :  { %494 = vperm.xlu0 %4020, %v4291_v37  }
  0x25   :  { %499 = vperm.xlu1 %4021, %v4296_v38  }
  0x27   :  { %4022 = vset.pattern.permute.xlu0 %v4065_v1 }
  0x28   :  { %729 = vperm.xlu0 %4022, %v4205_v22  }
  0x29   :  { %4023 = vset.pattern.permute.xlu1 %v4065_v1 }
  0x2a   :  { %733 = vperm.xlu1 %4023, %v4219_v25  }
  0x2c   :  { %741 = vperm.xlu0 %4022, %v4224_v26  }
  0x2e   :  { %737 = vperm.xlu1 %4023, %v4210_v23  }
  0x30   :  { %749 = vperm.xlu0 %4022, %v4236_v28  }
  0x32   :  { %745 = vperm.xlu1 %4023, %v4231_v27  }
  0x34   :  { %757 = vperm.xlu0 %4022, %v4248_v30  }
  0x36   :  { %753 = vperm.xlu1 %4023, %v4243_v29  }
  0x38   :  { %765 = vperm.xlu0 %4022, %v4260_v32  }
  0x3a   :  { %761 = vperm.xlu1 %4023, %v4255_v31  }
  0x3c   :  { %773 = vperm.xlu0 %4022, %v4272_v34  }
  0x3e   :  { %769 = vperm.xlu1 %4023, %v4267_v33  }
  0x40   :  { %781 = vperm.xlu0 %4022, %v4284_v36  }
  0x42   :  { %777 = vperm.xlu1 %4023, %v4279_v35  }
  0x44   :  { %789 = vperm.xlu0 %4022, %v4296_v38  }
  0x46   :  { %785 = vperm.xlu1 %4023, %v4291_v37  }
  0x48   :  { %4035 = vset.pattern.permute.xlu0 %v4064_v24 }
  0x4a   :  { %4034 = vset.pattern.permute.xlu1 %v4064_v24 }
  0x86   :  { %v425_v4 = vpop.permute.xlu0 %424 }
  0x88   :  { %v435_v3 = vpop.permute.xlu1 %434 }
  0x8c   :  { %v440_v7 = vpop.permute.xlu1 %439 }
  0x90   :  { %v450_v17 = vpop.permute.xlu1 %449 }
  0x94   :  { %v460_v23 = vpop.permute.xlu1 %459 }
  0x98   :  { %v470_v36 = vpop.permute.xlu1 %469 }
  0xd7   :  { %v134_v12 = vpop.f32.mrb[0].mxu1 }
  0xd8   :  { %v135_v13 = vadd.f32 %v134_v12, %v59_v11  ;;  %v3602_v14 = vpop.f32.mrb[1].mxu1  ;;  %v430_v11 = vpop.permute.xlu0 %429 }
  0xda   :  { %v138_v15 = vmax.f32 %v135_v13, 0.0 }
  0xdc   :  { %3606 = vmatmul.mubr.msk.f32.vlgmr.msra.gmra.mrb[2].mxu1 %vm149_vm4, %v138_v15  ;;  %v445_v18 = vpop.permute.xlu0 %444 }
  0xdd   :  { %3615 = vmatprep.mubr.msk.f32.mxu1 %vm4063_vm1, %v4062_v2  ;;  %3614 = vmatpush3.msra.mxu1 %v312_v0 }
  0xe0   :  { %v455_v26 = vpop.permute.xlu0 %454 }
 0x1af   :  { %v219_v41 = vpop.f32.mrb[2].mxu1 }
 0x1b0   :  { %v220_v42 = vadd.f32 %v219_v41, %v142_v40  ;;  %v3607_v43 = vpop.f32.mrb[3].mxu1  ;;  %v465_v40 = vpop.permute.xlu0 %464 }
 0x1b2   :  { %v223_v44 = vmax.f32 %v220_v42, 0.0 }
 0x1b4   :  { %3611 = vmatmul.mubr.msk.f32.vlgmr.msra.gmra.mrb[0].mxu0 %vm149_vm4, %v223_v44 }
 0x1b5   :  { %3838 = vmatpush3.bf16.msra.mxu0 %v3835_v21  ;;  %3624 = vmatprep.mubr.msk.f32.mxu0 %vm502_vm5, %v403_v45 }
 0x1b6   :  { %3622 = vmatprep.subr.mxu0 %v421_v46 }
 0x1b9   :  { %3623 = vmatpush3.msra.mxu0 %v421_v46 }
 0x1ba   :  { %3625 = vmatmul.mubr.msk.f32.vlgmr.msra.gmra.mrb[2].mxu0 %vm502_vm5, %v404_v47 }
 0x1bb   :  { %3627 = vmatprep.mubr.msk.f32.mxu0 %vm502_vm5, %v405_v48 }
 0x1be   :  { %3628 = vmatmul.mubr.msk.f32.gmra.mrb[4].mxu0 %vm502_vm5, %v406_v49  ;;  %v480_v49 = vpop.permute.xlu1 %479 }
 0x1bf   :  { %3630 = vmatprep.mubr.msk.f32.mxu0 %vm502_vm5, %v407_v50 }
 0x1c2   :  { %3631 = vmatmul.mubr.msk.f32.gmra.mrb[6].mxu0 %vm502_vm5, %v408_v51  ;;  %v490_v0 = vpop.permute.xlu1 %489 }
 0x1c3   :  { %3633 = vmatprep.mubr.msk.f32.mxu0 %vm502_vm5, %v409_v52  ;;  %v475_v52 = vpop.permute.xlu0 %474 }
 0x1c6   :  { %3634 = vmatmul.mubr.msk.f32.gmra.mrb[8].mxu0 %vm502_vm5, %v410_v53 }
 0x1c7   :  { %3636 = vmatprep.mubr.msk.f32.mxu0 %vm502_vm5, %v411_v54 }
 0x1ca   :  { %3637 = vmatmul.mubr.msk.f32.gmra.mrb[10].mxu0 %vm502_vm5, %v412_v55 }
 0x1cb   :  { %3639 = vmatprep.mubr.msk.f32.mxu0 %vm502_vm5, %v413_v56 }
 0x1ce   :  { %3640 = vmatmul.mubr.msk.f32.gmra.mrb[12].mxu0 %vm502_vm5, %v414_v57 }
 0x1cf   :  { %3642 = vmatprep.mubr.msk.f32.mxu0 %vm502_vm5, %v415_v58 }
 0x1d2   :  { %3643 = vmatmul.mubr.msk.f32.gmra.mrb[14].mxu0 %vm502_vm5, %v416_v59 }
 0x1d3   :  { %3645 = vmatprep.mubr.msk.f32.mxu0 %vm502_vm5, %v417_v60 }
 0x1d6   :  { %3646 = vmatmul.mubr.msk.f32.gmra.mrb[16].mxu0 %vm502_vm5, %v418_v61 }
 0x287   :  { %v301_v12 = vpop.f32.mrb[0].mxu0 }
 0x288   :  { %v302_v13 = vadd.f32 %v301_v12, %v227_v6  ;;  %v3612_v14 = vpop.f32.mrb[1].mxu0 }
 0x28a   :  { %v305_v15 = vmax.f32 %v302_v13, 0.0 }
 0x28c   :  { %3616 = vmatmul.mubr.msk.f32.vlgmr.msra.gmra.mrb[4].mxu1 %vm149_vm4, %v305_v15 }
 0x28d   :  { %v3626_v19 = vpop.f32.mrb[2].mxu0  ;;  %3680 = vmatprep.mubr.f32.mxu1 %v712_v16 }
 0x28e   :  { %v623_v20 = vadd.f32 %v3626_v19, %v430_v11  ;;  %v617_v21 = vpop.f32.mrb[3].mxu0 }
 0x28f   :  { %v618_v22 = vadd.f32 %v617_v21, %v425_v4  ;;  %v485_v4 = vpop.permute.xlu0 %484 }
 0x290   :  { %v697_v10 = vmax.f32 %v623_v20, 0.0 }
 0x291   :  { %v696_v24 = vmax.f32 %v618_v22, 0.0  ;;  %v3629_v25 = vpop.f32.mrb[4].mxu0 }
 0x292   :  { %v633_v27 = vadd.f32 %v3629_v25, %v440_v7  ;;  %v627_v28 = vpop.f32.mrb[5].mxu0 }
 0x293   :  { %v3839_v29 = vpack.c.bf16 %v697_v10, %v696_v24  ;;  %v628_v30 = vadd.f32 %v627_v28, %v435_v3  ;;  %v495_v20 = vpop.permute.xlu0 %494  ;;  %v714_v28 = vld [vmem:[%s5362_s4 + $0x10] sm:$0xff] }
 0x294   :  { %v699_v31 = vmax.f32 %v633_v27, 0.0  ;;  %v713_v27 = vld [vmem:[%s5362_s4 + $0x8] sm:$0xff] }
 0x295   :  { %v698_v32 = vmax.f32 %v628_v30, 0.0  ;;  %v3632_v33 = vpop.f32.mrb[6].mxu0  ;;  %3840 = vmatprep.subr.bf16.mxu1 %v3839_v29  ;;  %v716_v30 = vld [vmem:[%s5362_s4 + $0x20] sm:$0xff] }
 0x296   :  { %v643_v34 = vadd.f32 %v3632_v33, %v450_v17  ;;  %v637_v35 = vpop.f32.mrb[7].mxu0  ;;  %3842 = vmatpush3.bf16.msra.mxu1 %v3839_v29  ;;  %v500_v17 = vpop.permute.xlu1 %499  ;;  %v715_v29 = vld [vmem:[%s5362_s4 + $0x18] sm:$0xff] }
 0x297   :  { %v3843_v37 = vpack.c.bf16 %v699_v31, %v698_v32  ;;  %v638_v38 = vadd.f32 %v637_v35, %v445_v18  ;;  %v717_v31 = vld [vmem:[%s5362_s4 + $0x28] sm:$0xff]  ;;  %v718_v32 = vld [vmem:[%s5362_s4 + $0x30] sm:$0xff]  ;;  %v719_v33 = vld [vmem:[%s5362_s4 + $0x38] sm:$0xff] }
 0x298   :  { %v701_v41 = vmax.f32 %v643_v34, 0.0  ;;  %v720_v34 = vld [vmem:[%s5362_s4 + $0x40] sm:$0xff]  ;;  %v721_v35 = vld [vmem:[%s5362_s4 + $0x48] sm:$0xff] }
 0x299   :  { %v700_v42 = vmax.f32 %v638_v38, 0.0  ;;  %v3635_v43 = vpop.f32.mrb[8].mxu0  ;;  %3844 = vmatprep.subr.bf16.mxu1 %v3843_v37  ;;  %v724_v38 = vld [vmem:[%s5362_s4 + $0x60] sm:$0xff] }
 0x29a   :  { %v653_v44 = vadd.f32 %v3635_v43, %v460_v23  ;;  %v647_v45 = vpop.f32.mrb[9].mxu0  ;;  %3846 = vmatpush3.bf16.msra.mxu1 %v3843_v37  ;;  %v723_v37 = vld [vmem:[%s5362_s4 + $0x58] sm:$0xff] }
 0x29b   :  { %v3847_v46 = vpack.c.bf16 %v701_v41, %v700_v42  ;;  %v648_v47 = vadd.f32 %v647_v45, %v455_v26  ;;  %v726_v41 = vld [vmem:[%s5362_s4 + $0x70] sm:$0xff]  ;;  %v727_v42 = vld [vmem:[%s5362_s4 + $0x78] sm:$0xff]  ;;  %v730_v45 = vpop.permute.xlu0 %729 }
 0x29c   :  { %v703_v48 = vmax.f32 %v653_v44, 0.0 }
 0x29d   :  { %v702_v50 = vmax.f32 %v648_v47, 0.0  ;;  %v3638_v51 = vpop.f32.mrb[10].mxu0  ;;  %3848 = vmatprep.subr.bf16.mxu1 %v3847_v46 }
 0x29e   :  { %v663_v53 = vadd.f32 %v3638_v51, %v470_v36  ;;  %v657_v54 = vpop.f32.mrb[11].mxu0  ;;  %3850 = vmatpush3.bf16.msra.mxu1 %v3847_v46  ;;  %v722_v36 = vld [vmem:[%s5362_s4 + $0x50] sm:$0xff]  ;;  %v734_v46 = vpop.permute.xlu1 %733 }
 0x29f   :  { %v3851_v55 = vpack.c.bf16 %v703_v48, %v702_v50  ;;  %v658_v56 = vadd.f32 %v657_v54, %v465_v40  ;;  %v725_v40 = vld [vmem:[%s5362_s4 + $0x68] sm:$0xff]  ;;  %v742_v47 = vpop.permute.xlu0 %741  ;;  %s4067_s4 = smov 2  }
 0x2a0   :  { %v705_v57 = vmax.f32 %v663_v53, 0.0 }
 0x2a1   :  { %v704_v58 = vmax.f32 %v658_v56, 0.0  ;;  %v3641_v59 = vpop.f32.mrb[12].mxu0  ;;  %3852 = vmatprep.subr.bf16.mxu1 %v3851_v55 }
 0x2a2   :  { %v673_v60 = vadd.f32 %v3641_v59, %v480_v49  ;;  %v667_v61 = vpop.f32.mrb[13].mxu0  ;;  %3854 = vmatpush3.bf16.msra.mxu1 %v3851_v55  ;;  %v738_v48 = vpop.permute.xlu1 %737 }
 0x2a3   :  { %v3855_v1 = vpack.c.bf16 %v705_v57, %v704_v58  ;;  %v668_v3 = vadd.f32 %v667_v61, %v475_v52  ;;  %v750_v49 = vpop.permute.xlu0 %749 }
 0x2a4   :  { %v707_v6 = vmax.f32 %v673_v60, 0.0 }
 0x2a5   :  { %v706_v7 = vmax.f32 %v668_v3, 0.0  ;;  %v3644_v11 = vpop.f32.mrb[14].mxu0  ;;  %3856 = vmatprep.subr.bf16.mxu1 %v3855_v1 }
 0x2a6   :  { %v683_v12 = vadd.f32 %v3644_v11, %v490_v0  ;;  %v677_v13 = vpop.f32.mrb[15].mxu0  ;;  %3858 = vmatpush3.bf16.msra.mxu1 %v3855_v1  ;;  %v746_v50 = vpop.permute.xlu1 %745 }
 0x2a7   :  { %v3859_v14 = vpack.c.bf16 %v707_v6, %v706_v7  ;;  %v678_v15 = vadd.f32 %v677_v13, %v485_v4  ;;  %v758_v55 = vpop.permute.xlu0 %757 }
 0x2a8   :  { %v709_v16 = vmax.f32 %v683_v12, 0.0 }
 0x2a9   :  { %v708_v18 = vmax.f32 %v678_v15, 0.0  ;;  %v3647_v19 = vpop.f32.mrb[16].mxu0  ;;  %3860 = vmatprep.subr.bf16.mxu1 %v3859_v14 }
 0x2aa   :  { %v693_v21 = vadd.f32 %v3647_v19, %v500_v17  ;;  %v687_v22 = vpop.f32.mrb[17].mxu0  ;;  %3862 = vmatpush3.bf16.msra.mxu1 %v3859_v14  ;;  %v754_v57 = vpop.permute.xlu1 %753 }
 0x2ab   :  { %v3863_v10 = vpack.c.bf16 %v709_v16, %v708_v18  ;;  %v688_v23 = vadd.f32 %v687_v22, %v495_v20  ;;  %v766_v3 = vpop.permute.xlu0 %765 }
 0x2ac   :  { %v711_v24 = vmax.f32 %v693_v21, 0.0 }
 0x2ad   :  { %v710_v25 = vmax.f32 %v688_v23, 0.0  ;;  %3864 = vmatprep.subr.bf16.mxu1 %v3863_v10 }
 0x2ae   :  { %3866 = vmatpush3.bf16.msra.mxu1 %v3863_v10  ;;  %v762_v6 = vpop.permute.xlu1 %761 }
 0x2af   :  { %v3867_v26 = vpack.c.bf16 %v711_v24, %v710_v25  ;;  %v774_v14 = vpop.permute.xlu0 %773 }
 0x2b1   :  { %3868 = vmatprep.subr.bf16.mxu1 %v3867_v26 }
 0x2b2   :  { %3870 = vmatpush3.bf16.msra.mxu1 %v3867_v26  ;;  %v770_v16 = vpop.permute.xlu1 %769 }
 0x2b3   :  { %v782_v10 = vpop.permute.xlu0 %781 }
 0x2b5   :  { %3681 = vmatmul.mubr.f32.vlgmr.msra.gmra.mrb[6].mxu1 %v713_v27 }
 0x2b6   :  { %3683 = vmatprep.mubr.f32.mxu1 %v714_v28  ;;  %v778_v24 = vpop.permute.xlu1 %777 }
 0x2b9   :  { %3684 = vmatmul.mubr.f32.gmra.mrb[8].mxu1 %v715_v29  ;;  %v790_v29 = vpop.permute.xlu0 %789 }
 0x2ba   :  { %3686 = vmatprep.mubr.f32.mxu1 %v716_v30 }
 0x2bd   :  { %3687 = vmatmul.mubr.f32.gmra.mrb[10].mxu1 %v717_v31  ;;  %v786_v31 = vpop.permute.xlu1 %785 }
 0x2be   :  { %3689 = vmatprep.mubr.f32.mxu1 %v718_v32 }
 0x2c1   :  { %3690 = vmatmul.mubr.f32.gmra.mrb[12].mxu1 %v719_v33 }
 0x2c2   :  { %3692 = vmatprep.mubr.f32.mxu1 %v720_v34 }
 0x2c5   :  { %3693 = vmatmul.mubr.f32.gmra.mrb[14].mxu1 %v721_v35 }
 0x2c6   :  { %3695 = vmatprep.mubr.f32.mxu1 %v722_v36 }
 0x2c9   :  { %3696 = vmatmul.mubr.f32.gmra.mrb[16].mxu1 %v723_v37 }
 0x2ca   :  { %3698 = vmatprep.mubr.f32.mxu1 %v724_v38 }
 0x2cd   :  { %3699 = vmatmul.mubr.f32.gmra.mrb[18].mxu1 %v725_v40 }
 0x2ce   :  { %3701 = vmatprep.mubr.f32.mxu1 %v726_v41 }
 0x2d1   :  { %3702 = vmatmul.mubr.f32.gmra.mrb[20].mxu1 %v727_v42 }
 0x35f   :  { %v4454_v43 = vpop.f32.mrb[4].mxu1 }
 0x360   :  { %v3617_v44 = vpop.f32.mrb[5].mxu1 }
 0x388   :  { %v3682_v51 = vpop.f32.mrb[6].mxu1 }
 0x389   :  { %v864_v52 = vadd.f32 %v3682_v51, %v734_v46  ;;  %v858_v53 = vpop.f32.mrb[7].mxu1 }
 0x38a   :  { %v859_v54 = vadd.f32 %v858_v53, %v730_v45 }
 0x38b   :  { %939 = vst.msk [vmem:[#allocation2 + $0x8] sm:$0xff] %vm937_vm6, %v864_v52  ;;  %972 = vrot.lane.b32.xlu0 %v864_v52, %s4066_s15 }
 0x38c   :  { %938 = vst.msk [vmem:[#allocation2] sm:$0xff] %vm937_vm6, %v859_v54  ;;  %v3685_v56 = vpop.f32.mrb[8].mxu1  ;;  %970 = vrot.lane.b32.xlu1 %v859_v54, %s4066_s15 }
 0x38d   :  { %v874_v58 = vadd.f32 %v3685_v56, %v742_v47  ;;  %v868_v59 = vpop.f32.mrb[9].mxu1 }
 0x38e   :  { %v869_v60 = vadd.f32 %v868_v59, %v738_v48 }
 0x38f   :  { %941 = vst.msk [vmem:[#allocation2 + $0x18] sm:$0xff] %vm937_vm6, %v874_v58  ;;  %976 = vrot.lane.b32.xlu0 %v874_v58, %s4066_s15 }
 0x390   :  { %940 = vst.msk [vmem:[#allocation2 + $0x10] sm:$0xff] %vm937_vm6, %v869_v60  ;;  %v3688_v61 = vpop.f32.mrb[10].mxu1  ;;  %974 = vrot.lane.b32.xlu1 %v869_v60, %s4066_s15 }
 0x391   :  { %v884_v0 = vadd.f32 %v3688_v61, %v750_v49  ;;  %v878_v1 = vpop.f32.mrb[11].mxu1 }
 0x392   :  { %v879_v4 = vadd.f32 %v878_v1, %v746_v50 }
 0x393   :  { %943 = vst.msk [vmem:[#allocation2 + $0x28] sm:$0xff] %vm937_vm6, %v884_v0  ;;  %980 = vrot.lane.b32.xlu0 %v884_v0, %s4066_s15  ;;  %v1097_v36 = vld [vmem:[#allocation2] ss:$2 sm:$0xff]  ;;  %v1129_v38 = vld [vmem:[#allocation2 + $0x1] ss:$2 sm:$0xff] }
 0x394   :  { %942 = vst.msk [vmem:[#allocation2 + $0x20] sm:$0xff] %vm937_vm6, %v879_v4  ;;  %v3691_v7 = vpop.f32.mrb[12].mxu1  ;;  %978 = vrot.lane.b32.xlu1 %v879_v4, %s4066_s15 }
 0x395   :  { %v894_v11 = vadd.f32 %v3691_v7, %v758_v55  ;;  %v888_v12 = vpop.f32.mrb[13].mxu1 }
 0x396   :  { %v889_v13 = vadd.f32 %v888_v12, %v754_v57 }
 0x397   :  { %945 = vst.msk [vmem:[#allocation2 + $0x38] sm:$0xff] %vm937_vm6, %v894_v11  ;;  %984 = vrot.lane.b32.xlu0 %v894_v11, %s4066_s15  ;;  %v1099_v35 = vld [vmem:[#allocation2 + $0x10] ss:$2 sm:$0xff]  ;;  %v1131_v37 = vld [vmem:[#allocation2 + $0x11] ss:$2 sm:$0xff] }
 0x398   :  { %944 = vst.msk [vmem:[#allocation2 + $0x30] sm:$0xff] %vm937_vm6, %v889_v13  ;;  %v3694_v15 = vpop.f32.mrb[14].mxu1  ;;  %982 = vrot.lane.b32.xlu1 %v889_v13, %s4066_s15 }
 0x399   :  { %v904_v17 = vadd.f32 %v3694_v15, %v766_v3  ;;  %v898_v18 = vpop.f32.mrb[15].mxu1 }
 0x39a   :  { %v899_v19 = vadd.f32 %v898_v18, %v762_v6 }
 0x39b   :  { %947 = vst.msk [vmem:[#allocation2 + $0x48] sm:$0xff] %vm937_vm6, %v904_v17  ;;  %988 = vrot.lane.b32.xlu0 %v904_v17, %s4066_s15  ;;  %v1101_v41 = vld [vmem:[#allocation2 + $0x20] ss:$2 sm:$0xff]  ;;  %v1133_v44 = vld [vmem:[#allocation2 + $0x21] ss:$2 sm:$0xff] }
 0x39c   :  { %946 = vst.msk [vmem:[#allocation2 + $0x40] sm:$0xff] %vm937_vm6, %v899_v19  ;;  %v3697_v20 = vpop.f32.mrb[16].mxu1  ;;  %986 = vrot.lane.b32.xlu1 %v899_v19, %s4066_s15  ;;  %v1034_v17 = vld [vmem:[%s5360_s2] ss:$2 sm:$0xff] }
 0x39d   :  { %v914_v21 = vadd.f32 %v3697_v20, %v774_v14  ;;  %v908_v22 = vpop.f32.mrb[17].mxu1 }
 0x39e   :  { %v909_v23 = vadd.f32 %v908_v22, %v770_v16  ;;  %v3334_v16 = vld [vmem:[%s5360_s2 + $0x10] ss:$2 sm:$0xff]  ;;  %v3350_v22 = vld [vmem:[%s5360_s2 + $0x11] ss:$2 sm:$0xff] }
 0x39f   :  { %949 = vst.msk [vmem:[#allocation2 + $0x58] sm:$0xff] %vm937_vm6, %v914_v21  ;;  %992 = vrot.lane.b32.xlu0 %v914_v21, %s4066_s15  ;;  %v1103_v40 = vld [vmem:[#allocation2 + $0x30] ss:$2 sm:$0xff]  ;;  %v1135_v42 = vld [vmem:[#allocation2 + $0x31] ss:$2 sm:$0xff] }
 0x3a0   :  { %948 = vst.msk [vmem:[#allocation2 + $0x50] sm:$0xff] %vm937_vm6, %v909_v23  ;;  %v3700_v25 = vpop.f32.mrb[18].mxu1  ;;  %990 = vrot.lane.b32.xlu1 %v909_v23, %s4066_s15 }
 0x3a1   :  { %v924_v26 = vadd.f32 %v3700_v25, %v782_v10  ;;  %v918_v27 = vpop.f32.mrb[19].mxu1  ;;  %v3349_v10 = vld [vmem:[%s5360_s2 + $0x1] ss:$2 sm:$0xff] }
 0x3a2   :  { %v919_v28 = vadd.f32 %v918_v27, %v778_v24 }
 0x3a3   :  { %951 = vst.msk [vmem:[#allocation2 + $0x68] sm:$0xff] %vm937_vm6, %v924_v26  ;;  %996 = vrot.lane.b32.xlu0 %v924_v26, %s4066_s15  ;;  %v1105_v46 = vld [vmem:[#allocation2 + $0x40] ss:$2 sm:$0xff]  ;;  %v1137_v48 = vld [vmem:[#allocation2 + $0x41] ss:$2 sm:$0xff] }
 0x3a4   :  { %950 = vst.msk [vmem:[#allocation2 + $0x60] sm:$0xff] %vm937_vm6, %v919_v28  ;;  %v3703_v30 = vpop.f32.mrb[20].mxu1  ;;  %994 = vrot.lane.b32.xlu1 %v919_v28, %s4066_s15 }
 0x3a5   :  { %v934_v32 = vadd.f32 %v3703_v30, %v790_v29  ;;  %v928_v33 = vpop.f32.mrb[21].mxu1 }
 0x3a6   :  { %v929_v34 = vadd.f32 %v928_v33, %v786_v31 }
 0x3a7   :  { %953 = vst.msk [vmem:[#allocation2 + $0x78] sm:$0xff] %vm937_vm6, %v934_v32  ;;  %1000 = vrot.lane.b32.xlu0 %v934_v32, %s4066_s15  ;;  %v1107_v45 = vld [vmem:[#allocation2 + $0x50] ss:$2 sm:$0xff]  ;;  %v1139_v47 = vld [vmem:[#allocation2 + $0x51] ss:$2 sm:$0xff] }
 0x3a8   :  { %952 = vst.msk [vmem:[#allocation2 + $0x70] sm:$0xff] %vm937_vm6, %v929_v34  ;;  %998 = vrot.lane.b32.xlu1 %v929_v34, %s4066_s15 }
 0x3ab   :  { %1178 = vrot.lane.b32.xlu0 %v1099_v35, %s4067_s4  ;;  %v1109_v50 = vld [vmem:[#allocation2 + $0x60] ss:$2 sm:$0xff]  ;;  %v1141_v52 = vld [vmem:[#allocation2 + $0x61] ss:$2 sm:$0xff] }
 0x3ac   :  { %1176 = vrot.lane.b32.xlu1 %v1097_v36, %s4067_s4  ;;  %v3352_v36 = vld [vmem:[%s5360_s2 + $0x31] ss:$2 sm:$0xff] }
 0x3af   :  { %1259 = vrot.lane.b32.xlu0 %v1131_v37, %s4067_s4  ;;  %v1111_v49 = vld [vmem:[#allocation2 + $0x70] ss:$2 sm:$0xff]  ;;  %v1143_v51 = vld [vmem:[#allocation2 + $0x71] ss:$2 sm:$0xff]  ;;  %v3351_v37 = vld [vmem:[%s5360_s2 + $0x21] ss:$2 sm:$0xff] }
 0x3b0   :  { %1257 = vrot.lane.b32.xlu1 %v1129_v38, %s4067_s4 }
 0x3b3   :  { %1182 = vrot.lane.b32.xlu0 %v1103_v40, %s4067_s4 }
 0x3b4   :  { %1180 = vrot.lane.b32.xlu1 %v1101_v41, %s4067_s4 }
 0x3b7   :  { %1263 = vrot.lane.b32.xlu0 %v1135_v42, %s4067_s4 }
 0x3b8   :  { %1261 = vrot.lane.b32.xlu1 %v1133_v44, %s4067_s4  ;;  %v1804_v44 = vld [vmem:[%s5364_s6] sm:$0xff] }
 0x3bb   :  { %1186 = vrot.lane.b32.xlu0 %v1107_v45, %s4067_s4  ;;  %v1805_v45 = vld [vmem:[%s5364_s6 + $0x8] sm:$0x1] }
 0x3bc   :  { %1184 = vrot.lane.b32.xlu1 %v1105_v46, %s4067_s4 }
 0x3bf   :  { %1267 = vrot.lane.b32.xlu0 %v1139_v47, %s4067_s4 }
 0x3c0   :  { %1265 = vrot.lane.b32.xlu1 %v1137_v48, %s4067_s4 }
 0x3c3   :  { %1190 = vrot.lane.b32.xlu0 %v1111_v49, %s4067_s4  ;;  %v3871_v49 = vpack.c.bf16 %v1805_v45, %v1804_v44  ;;  %v3357_v45 = vld [vmem:[%s5360_s2 + $0x81] ss:$2 sm:$0xff] }
 0x3c4   :  { %1188 = vrot.lane.b32.xlu1 %v1109_v50, %s4067_s4 }
 0x3c5   :  { %3873 = vmatprep.subr.msk.bf16.mxu0 %vm3872_vm10, %v3871_v49 }
 0x3c6   :  { %3876 = vmatpush3.bf16.msk.msra.mxu0 %vm3872_vm10, %v3871_v49 }
 0x3c7   :  { %1271 = vrot.lane.b32.xlu0 %v1143_v51, %s4067_s4 }
 0x3c8   :  { %1269 = vrot.lane.b32.xlu1 %v1141_v52, %s4067_s4 }
 0x3fd   :  { %v973_v53 = vpop.permute.xlu0 %972 }
 0x3fe   :  { %1019 = vst.msk [vmem:[#allocation2 + $0x88] sm:$0xff] %vm937_vm6, %v973_v53  ;;  %v971_v54 = vpop.permute.xlu1 %970 }
 0x3ff   :  { %1018 = vst.msk [vmem:[#allocation2 + $0x80] sm:$0xff] %vm937_vm6, %v971_v54 }
 0x401   :  { %v977_v55 = vpop.permute.xlu0 %976 }
 0x402   :  { %1021 = vst.msk [vmem:[#allocation2 + $0x98] sm:$0xff] %vm937_vm6, %v977_v55  ;;  %v975_v56 = vpop.permute.xlu1 %974 }
 0x403   :  { %1020 = vst.msk [vmem:[#allocation2 + $0x90] sm:$0xff] %vm937_vm6, %v975_v56 }
 0x405   :  { %v981_v57 = vpop.permute.xlu0 %980 }
 0x406   :  { %1023 = vst.msk [vmem:[#allocation2 + $0xa8] sm:$0xff] %vm937_vm6, %v981_v57  ;;  %v979_v58 = vpop.permute.xlu1 %978  ;;  %v1113_v59 = vld [vmem:[#allocation2 + $0x80] ss:$2 sm:$0xff]  ;;  %v1145_v1 = vld [vmem:[#allocation2 + $0x81] ss:$2 sm:$0xff] }
 0x407   :  { %1022 = vst.msk [vmem:[#allocation2 + $0xa0] sm:$0xff] %vm937_vm6, %v979_v58  ;;  %1192 = vrot.lane.b32.xlu1 %v1113_v59, %s4067_s4  ;;  %v3354_v57 = vld [vmem:[%s5360_s2 + $0x51] ss:$2 sm:$0xff]  ;;  %v3353_v58 = vld [vmem:[%s5360_s2 + $0x41] ss:$2 sm:$0xff] }
 0x409   :  { %v985_v60 = vpop.permute.xlu0 %984 }
 0x40a   :  { %1025 = vst.msk [vmem:[#allocation2 + $0xb8] sm:$0xff] %vm937_vm6, %v985_v60  ;;  %v983_v61 = vpop.permute.xlu1 %982  ;;  %v1115_v0 = vld [vmem:[#allocation2 + $0x90] ss:$2 sm:$0xff]  ;;  %v1147_v6 = vld [vmem:[#allocation2 + $0x91] ss:$2 sm:$0xff] }
 0x40b   :  { %1024 = vst.msk [vmem:[#allocation2 + $0xb0] sm:$0xff] %vm937_vm6, %v983_v61  ;;  %1194 = vrot.lane.b32.xlu0 %v1115_v0, %s4067_s4  ;;  %1273 = vrot.lane.b32.xlu1 %v1145_v1, %s4067_s4 }
 0x40d   :  { %v989_v3 = vpop.permute.xlu0 %988 }
 0x40e   :  { %1027 = vst.msk [vmem:[#allocation2 + $0xc8] sm:$0xff] %vm937_vm6, %v989_v3  ;;  %v987_v4 = vpop.permute.xlu1 %986  ;;  %v1117_v27 = vld [vmem:[#allocation2 + $0xa0] ss:$2 sm:$0xff]  ;;  %v1149_v35 = vld [vmem:[#allocation2 + $0xa1] ss:$2 sm:$0xff] }
 0x40f   :  { %1026 = vst.msk [vmem:[#allocation2 + $0xc0] sm:$0xff] %vm937_vm6, %v987_v4  ;;  %1275 = vrot.lane.b32.xlu0 %v1147_v6, %s4067_s4 }
 0x411   :  { %v993_v7 = vpop.permute.xlu0 %992 }
 0x412   :  { %1029 = vst.msk [vmem:[#allocation2 + $0xd8] sm:$0xff] %vm937_vm6, %v993_v7  ;;  %v991_v11 = vpop.permute.xlu1 %990  ;;  %v1119_v25 = vld [vmem:[#allocation2 + $0xb0] ss:$2 sm:$0xff]  ;;  %v1151_v33 = vld [vmem:[#allocation2 + $0xb1] ss:$2 sm:$0xff] }
 0x413   :  { %1028 = vst.msk [vmem:[#allocation2 + $0xd0] sm:$0xff] %vm937_vm6, %v991_v11 }
 0x415   :  { %v997_v12 = vpop.permute.xlu0 %996 }
 0x416   :  { %1031 = vst.msk [vmem:[#allocation2 + $0xe8] sm:$0xff] %vm937_vm6, %v997_v12  ;;  %v995_v13 = vpop.permute.xlu1 %994  ;;  %v1121_v46 = vld [vmem:[#allocation2 + $0xc0] ss:$2 sm:$0xff]  ;;  %v1153_v56 = vld [vmem:[#allocation2 + $0xc1] ss:$2 sm:$0xff] }
 0x417   :  { %1030 = vst.msk [vmem:[#allocation2 + $0xe0] sm:$0xff] %vm937_vm6, %v995_v13 }
 0x419   :  { %v1001_v14 = vpop.permute.xlu0 %1000 }
 0x41a   :  { %1033 = vst.msk [vmem:[#allocation2 + $0xf8] sm:$0xff] %vm937_vm6, %v1001_v14  ;;  %v999_v15 = vpop.permute.xlu1 %998  ;;  %v1123_v41 = vld [vmem:[#allocation2 + $0xd0] ss:$2 sm:$0xff]  ;;  %v1155_v53 = vld [vmem:[#allocation2 + $0xd1] ss:$2 sm:$0xff] }
 0x41b   :  { %1032 = vst.msk [vmem:[#allocation2 + $0xf0] sm:$0xff] %vm937_vm6, %v999_v15  ;;  %vm2582_vm6 = vcmask 261120  }
 0x41d   :  { %v1179_v18 = vpop.permute.xlu0 %1178 }
 0x41e   :  { %v1177_v19 = vpop.permute.xlu1 %1176  ;;  %v1226_v20 = vsel %vm1224_vm7, %v3334_v16, %v1179_v18  ;;  %v1125_v1 = vld [vmem:[#allocation2 + $0xe0] ss:$2 sm:$0xff]  ;;  %v1157_v15 = vld [vmem:[#allocation2 + $0xe1] ss:$2 sm:$0xff]  ;;  %v3356_v16 = vld [vmem:[%s5360_s2 + $0x71] ss:$2 sm:$0xff] }
 0x41f   :  { %1677 = vrot.lane.b32.xlu0 %v1226_v20, %s4068_s19  ;;  %v1225_v21 = vsel %vm1224_vm7, %v1034_v17, %v1177_v19  ;;  %v3355_v17 = vld [vmem:[%s5360_s2 + $0x61] ss:$2 sm:$0xff] }
 0x420   :  { %1675 = vrot.lane.b32.xlu1 %v1225_v21, %s4068_s19  ;;  %v3336_v21 = vld [vmem:[%s5360_s2 + $0x30] ss:$2 sm:$0xff] }
 0x421   :  { %v1260_v23 = vpop.permute.xlu0 %1259 }
 0x422   :  { %v1258_v24 = vpop.permute.xlu1 %1257  ;;  %v4541_v26 = vsel %vm1224_vm7, %v3350_v22, %v1260_v23  ;;  %v1127_v61 = vld [vmem:[#allocation2 + $0xf0] ss:$2 sm:$0xff]  ;;  %v1159_v12 = vld [vmem:[#allocation2 + $0xf1] ss:$2 sm:$0xff]  ;;  %v3335_v23 = vld [vmem:[%s5360_s2 + $0x20] ss:$2 sm:$0xff] }
 0x423   :  { %1198 = vrot.lane.b32.xlu0 %v1119_v25, %s4067_s4  ;;  %v1339_v28 = vrot.slane %v4541_v26, 7  ;;  %v4546_v29 = vsel %vm1224_vm7, %v3349_v10, %v1258_v24 }
 0x424   :  { %1196 = vrot.lane.b32.xlu1 %v1117_v27, %s4067_s4  ;;  %v1338_v30 = vrot.slane %v4546_v29, 7 }
 0x425   :  { %v4550_v31 = vpop.permute.xlu0 %1182 }
 0x426   :  { %v4552_v32 = vpop.permute.xlu1 %1180  ;;  %v4557_v34 = vsel %vm1337_vm8, %v1338_v30, %v1339_v28  ;;  %v1228_v25 = vsel %vm1224_vm7, %v3336_v21, %v4550_v31  ;;  %v3337_v31 = vld [vmem:[%s5360_s2 + $0x40] ss:$2 sm:$0xff] }
 0x427   :  { %1279 = vrot.lane.b32.xlu0 %v1151_v33, %s4067_s4  ;;  %v3338_v33 = vld [vmem:[%s5360_s2 + $0x50] ss:$2 sm:$0xff] }
 0x428   :  { %1277 = vrot.lane.b32.xlu1 %v1149_v35, %s4067_s4 }
 0x429   :  { %v1264_v38 = vpop.permute.xlu0 %1263 }
 0x42a   :  { %v1262_v40 = vpop.permute.xlu1 %1261  ;;  %v1308_v42 = vsel %vm1224_vm7, %v3352_v36, %v1264_v38  ;;  %v3340_v36 = vld [vmem:[%s5360_s2 + $0x70] ss:$2 sm:$0xff] }
 0x42b   :  { %1202 = vrot.lane.b32.xlu0 %v1123_v41, %s4067_s4  ;;  %v1343_v47 = vrot.slane %v1308_v42, 7  ;;  %v1307_v48 = vsel %vm1224_vm7, %v3351_v37, %v1262_v40  ;;  %v3339_v37 = vld [vmem:[%s5360_s2 + $0x60] ss:$2 sm:$0xff] }
 0x42c   :  { %1200 = vrot.lane.b32.xlu1 %v1121_v46, %s4067_s4  ;;  %v1341_v50 = vrot.slane %v1307_v48, 7  ;;  %v3341_v41 = vld [vmem:[%s5360_s2 + $0x80] ss:$2 sm:$0xff]  ;;  %v3342_v46 = vld [vmem:[%s5360_s2 + $0x90] ss:$2 sm:$0xff] }
 0x42d   :  { %v1187_v51 = vpop.permute.xlu0 %1186 }
 0x42e   :  { %v1185_v52 = vpop.permute.xlu1 %1184  ;;  %v4579_v54 = vsel %vm1337_vm8, %v1341_v50, %v1343_v47  ;;  %v4582_v55 = vsel %vm1337_vm8, %v1339_v28, %v1341_v50  ;;  %v1227_v28 = vsel %vm1224_vm7, %v3335_v23, %v4552_v32  ;;  %v1230_v35 = vsel %vm1224_vm7, %v3338_v33, %v1187_v51 }
 0x42f   :  { %1283 = vrot.lane.b32.xlu0 %v1155_v53, %s4067_s4  ;;  %v1229_v32 = vsel %vm1224_vm7, %v3337_v31, %v1185_v52  ;;  %v3358_v52 = vld [vmem:[%s5360_s2 + $0x91] ss:$2 sm:$0xff] }
 0x430   :  { %1281 = vrot.lane.b32.xlu1 %v1153_v56, %s4067_s4  ;;  %v3362_v31 = vld [vmem:[%s5360_s2 + $0xd1] ss:$2 sm:$0xff] }
 0x431   :  { %v1268_v59 = vpop.permute.xlu0 %1267 }
 0x432   :  { %v1266_v60 = vpop.permute.xlu1 %1265  ;;  %v1310_v0 = vsel %vm1224_vm7, %v3354_v57, %v1268_v59 }
 0x433   :  { %1206 = vrot.lane.b32.xlu0 %v1127_v61, %s4067_s4  ;;  %v1347_v3 = vrot.slane %v1310_v0, 7  ;;  %v1309_v4 = vsel %vm1224_vm7, %v3353_v58, %v1266_v60 }
 0x434   :  { %1204 = vrot.lane.b32.xlu1 %v1125_v1, %s4067_s4  ;;  %v1345_v6 = vrot.slane %v1309_v4, 7  ;;  %v3343_v1 = vld [vmem:[%s5360_s2 + $0xa0] ss:$2 sm:$0xff] }
 0x435   :  { %v1191_v7 = vpop.permute.xlu0 %1190 }
 0x436   :  { %v1189_v11 = vpop.permute.xlu1 %1188  ;;  %v4597_v13 = vsel %vm1337_vm8, %v1345_v6, %v1347_v3  ;;  %v4600_v14 = vsel %vm1337_vm8, %v1343_v47, %v1345_v6  ;;  %v1232_v38 = vsel %vm1224_vm7, %v3340_v36, %v1191_v7 }
 0x437   :  { %1287 = vrot.lane.b32.xlu0 %v1159_v12, %s4067_s4  ;;  %v1231_v40 = vsel %vm1224_vm7, %v3339_v37, %v1189_v11  ;;  %v3360_v11 = vld [vmem:[%s5360_s2 + $0xb1] ss:$2 sm:$0xff]  ;;  %v3359_v12 = vld [vmem:[%s5360_s2 + $0xa1] ss:$2 sm:$0xff] }
 0x438   :  { %1285 = vrot.lane.b32.xlu1 %v1157_v15, %s4067_s4  ;;  %s4073_s4 = smov 32  }
 0x439   :  { %v1272_v18 = vpop.permute.xlu0 %1271 }
 0x43a   :  { %v1270_v19 = vpop.permute.xlu1 %1269  ;;  %v1312_v20 = vsel %vm1224_vm7, %v3356_v16, %v1272_v18 }
 0x43b   :  { %1725 = vrot.lane.b32.xlu0 %v4541_v26, %s4070_s20  ;;  %v1351_v22 = vrot.slane %v1312_v20, 7  ;;  %v1311_v10 = vsel %vm1224_vm7, %v3355_v17, %v1270_v19 }
 0x43c   :  { %1723 = vrot.lane.b32.xlu1 %v4546_v29, %s4070_s20  ;;  %v1349_v24 = vrot.slane %v1311_v10, 7 }
 0x43e   :  { %v4625_v26 = vsel %vm1337_vm8, %v1349_v24, %v1351_v22  ;;  %v4628_v27 = vsel %vm1337_vm8, %v1347_v3, %v1349_v24 }
 0x43f   :  { %1681 = vrot.lane.b32.xlu0 %v1228_v25, %s4068_s19 }
 0x440   :  { %1679 = vrot.lane.b32.xlu1 %v1227_v28, %s4068_s19 }
 0x443   :  { %1729 = vrot.lane.b32.xlu0 %v1308_v42, %s4070_s20 }
 0x444   :  { %1727 = vrot.lane.b32.xlu1 %v1307_v48, %s4070_s20 }
 0x447   :  { %1685 = vrot.lane.b32.xlu0 %v1230_v35, %s4068_s19  ;;  %v3361_v35 = vld [vmem:[%s5360_s2 + $0xc1] ss:$2 sm:$0xff] }
 0x448   :  { %1683 = vrot.lane.b32.xlu1 %v1229_v32, %s4068_s19 }
 0x44b   :  { %1733 = vrot.lane.b32.xlu0 %v1310_v0, %s4070_s20  ;;  %v3344_v0 = vld [vmem:[%s5360_s2 + $0xb0] ss:$2 sm:$0xff] }
 0x44c   :  { %1731 = vrot.lane.b32.xlu1 %v1309_v4, %s4070_s20 }
 0x44f   :  { %1689 = vrot.lane.b32.xlu0 %v1232_v38, %s4068_s19 }
 0x450   :  { %1687 = vrot.lane.b32.xlu1 %v1231_v40, %s4068_s19 }
 0x453   :  { %1737 = vrot.lane.b32.xlu0 %v1312_v20, %s4070_s20  ;;  %v3346_v20 = vld [vmem:[%s5360_s2 + $0xd0] ss:$2 sm:$0xff] }
 0x454   :  { %1735 = vrot.lane.b32.xlu1 %v1311_v10, %s4070_s20 }
 0x479   :  { %v1193_v42 = vpop.permute.xlu1 %1192 }
 0x47a   :  { %v1233_v44 = vsel %vm1224_vm7, %v3341_v41, %v1193_v42  ;;  %v3348_v41 = vld [vmem:[%s5360_s2 + $0xf0] ss:$2 sm:$0xff] }
 0x47b   :  { %1691 = vrot.lane.b32.xlu1 %v1233_v44, %s4068_s19  ;;  %v3347_v44 = vld [vmem:[%s5360_s2 + $0xe0] ss:$2 sm:$0xff] }
 0x47d   :  { %v1195_v47 = vpop.permute.xlu0 %1194  ;;  %v1274_v48 = vpop.permute.xlu1 %1273 }
 0x47e   :  { %v1313_v49 = vsel %vm1224_vm7, %v3357_v45, %v1274_v48  ;;  %v1234_v50 = vsel %vm1224_vm7, %v3342_v46, %v1195_v47  ;;  %v1407_v46 = vand.u32 63, %v4173_v8 }
 0x47f   :  { %v1353_v51 = vrot.slane %v1313_v49, 7  ;;  %1693 = vrot.lane.b32.xlu0 %v1234_v50, %s4068_s19  ;;  %1739 = vrot.lane.b32.xlu1 %v1313_v49, %s4070_s20 }
 0x480   :  { %vm1595_vm11 = vcmp.eq.s32.totalorder %v1407_v46, 0 }
 0x481   :  { %v1276_v53 = vpop.permute.xlu0 %1275  ;;  %v4679_v56 = vsel %vm1337_vm8, %v1351_v22, %v1353_v51  ;;  %v3345_v22 = vld [vmem:[%s5360_s2 + $0xc0] ss:$2 sm:$0xff] }
 0x482   :  { %v1314_v57 = vsel %vm1224_vm7, %v3358_v52, %v1276_v53  ;;  %v3364_v52 = vld [vmem:[%s5360_s2 + $0xf1] ss:$2 sm:$0xff]  ;;  %v3363_v53 = vld [vmem:[%s5360_s2 + $0xe1] ss:$2 sm:$0xff] }
 0x483   :  { %v1355_v58 = vrot.slane %v1314_v57, 7  ;;  %1741 = vrot.lane.b32.xlu0 %v1314_v57, %s4070_s20 }
 0x485   :  { %v4684_v59 = vsel %vm1337_vm8, %v1353_v51, %v1355_v58 }
 0x491   :  { %v4686_v60 = vpop.permute.xlu0 %1677 }
 0x492   :  { %v4688_v61 = vpop.permute.xlu1 %1675 }
 0x495   :  { %v1199_v3 = vpop.permute.xlu0 %1198 }
 0x496   :  { %v1236_v4 = vsel %vm1224_vm7, %v3344_v0, %v1199_v3  ;;  %v1197_v6 = vpop.permute.xlu1 %1196 }
 0x497   :  { %v1235_v7 = vsel %vm1224_vm7, %v3343_v1, %v1197_v6  ;;  %1697 = vrot.lane.b32.xlu0 %v1236_v4, %s4068_s19 }
 0x498   :  { %1695 = vrot.lane.b32.xlu1 %v1235_v7, %s4068_s19 }
 0x499   :  { %v1280_v15 = vpop.permute.xlu0 %1279 }
 0x49a   :  { %v1316_v16 = vsel %vm1224_vm7, %v3360_v11, %v1280_v15  ;;  %v1278_v17 = vpop.permute.xlu1 %1277 }
 0x49b   :  { %v1359_v18 = vrot.slane %v1316_v16, 7  ;;  %v1315_v19 = vsel %vm1224_vm7, %v3359_v12, %v1278_v17  ;;  %1745 = vrot.lane.b32.xlu0 %v1316_v16, %s4070_s20  ;;  %v1772_v16 = vsel %vm60_vm2, %v4557_v34, %v4686_v60 }
 0x49c   :  { %v1357_v21 = vrot.slane %v1315_v19, 7  ;;  %1743 = vrot.lane.b32.xlu1 %v1315_v19, %s4070_s20 }
 0x49d   :  { %v1203_v10 = vpop.permute.xlu0 %1202 }
 0x49e   :  { %v1238_v23 = vsel %vm1224_vm7, %v3346_v20, %v1203_v10  ;;  %v1201_v24 = vpop.permute.xlu1 %1200  ;;  %v4718_v25 = vsel %vm1337_vm8, %v1357_v21, %v1359_v18  ;;  %v4721_v28 = vsel %vm1337_vm8, %v1355_v58, %v1357_v21  ;;  %v1385_v58 = vsel %vm1337_vm8, 0.0, %v1338_v30 }
 0x49f   :  { %v1237_v33 = vsel %vm1224_vm7, %v3345_v22, %v1201_v24  ;;  %1701 = vrot.lane.b32.xlu0 %v1238_v23, %s4068_s19  ;;  %v1643_v7 = vsel %vm1595_vm11, 0.0, %v1385_v58  ;;  %vm2766_vm11 = vcmask 523264  }
 0x4a0   :  { %1699 = vrot.lane.b32.xlu1 %v1237_v33, %s4068_s19  ;;  %v1771_v29 = vsel %vm60_vm2, %v1643_v7, %v4688_v61 }
 0x4a1   :  { %v1284_v32 = vpop.permute.xlu0 %1283 }
 0x4a2   :  { %v1318_v36 = vsel %vm1224_vm7, %v3362_v31, %v1284_v32  ;;  %v1282_v37 = vpop.permute.xlu1 %1281 }
 0x4a3   :  { %v1363_v38 = vrot.slane %v1318_v36, 7  ;;  %v1317_v40 = vsel %vm1224_vm7, %v3361_v35, %v1282_v37  ;;  %1749 = vrot.lane.b32.xlu0 %v1318_v36, %s4070_s20 }
 0x4a4   :  { %v1361_v42 = vrot.slane %v1317_v40, 7  ;;  %1747 = vrot.lane.b32.xlu1 %v1317_v40, %s4070_s20 }
 0x4a5   :  { %v1207_v45 = vpop.permute.xlu0 %1206 }
 0x4a6   :  { %v1240_v47 = vsel %vm1224_vm7, %v3348_v41, %v1207_v45  ;;  %v1205_v48 = vpop.permute.xlu1 %1204  ;;  %v4745_v49 = vsel %vm1337_vm8, %v1361_v42, %v1363_v38  ;;  %v4748_v50 = vsel %vm1337_vm8, %v1359_v18, %v1361_v42 }
 0x4a7   :  { %v1239_v51 = vsel %vm1224_vm7, %v3347_v44, %v1205_v48  ;;  %1705 = vrot.lane.b32.xlu0 %v1240_v47, %s4068_s19  ;;  %v1395_v44 = vadd.s32 64, %v4173_v8 }
 0x4a8   :  { %1703 = vrot.lane.b32.xlu1 %v1239_v51, %s4068_s19 }
 0x4a9   :  { %v1288_v57 = vpop.permute.xlu0 %1287  ;;  %v1463_v45 = vand.u32 63, %v1395_v44 }
 0x4aa   :  { %v1320_v0 = vsel %vm1224_vm7, %v3364_v52, %v1288_v57  ;;  %v1286_v1 = vpop.permute.xlu1 %1285 }
 0x4ab   :  { %v1367_v3 = vrot.slane %v1320_v0, 7  ;;  %v1319_v4 = vsel %vm1224_vm7, %v3363_v53, %v1286_v1  ;;  %1753 = vrot.lane.b32.xlu0 %v1320_v0, %s4070_s20  ;;  %vm1603_vm14 = vcmp.eq.s32.totalorder %v1463_v45, 0  ;;  %vm2597_vm7 = vcmask 392192  }
 0x4ac   :  { %v1365_v6 = vrot.slane %v1319_v4, 7  ;;  %1751 = vrot.lane.b32.xlu1 %v1319_v4, %s4070_s20  ;;  %v1651_v47 = vsel %vm1603_vm14, 0.0, %v4679_v56 }
 0x4ad   :  { %v1726_v11 = vpop.permute.xlu0 %1725 }
 0x4ae   :  { %v1724_v30 = vpop.permute.xlu1 %1723  ;;  %v4769_v12 = vsel %vm1337_vm8, %v1365_v6, %v1367_v3  ;;  %v4772_v15 = vsel %vm1337_vm8, %v1363_v38, %v1365_v6  ;;  %v1789_v18 = vsel %vm1787_vm12, %v1772_v16, %v1726_v11 }
 0x4af   :  { %v1788_v17 = vsel %vm1787_vm12, %v1771_v29, %v1724_v30 }
 0x4b0   :  { %3708 = vmatprep.mubr.msk.f32.mxu0 %vm1810_vm13, %v1788_v17 }
 0x4b1   :  { %v1682_v19 = vpop.permute.xlu0 %1681  ;;  %3709 = vmatmul.mubr.msk.f32.vlgmr.msra.gmra.mrb[18].mxu0 %vm1810_vm13, %v1789_v18 }
 0x4b2   :  { %v1680_v61 = vpop.permute.xlu1 %1679  ;;  %v1774_v10 = vsel %vm60_vm2, %v4579_v54, %v1682_v19 }
 0x4b3   :  { %v1773_v21 = vsel %vm60_vm2, %v4582_v55, %v1680_v61 }
 0x4b5   :  { %v1730_v20 = vpop.permute.xlu0 %1729 }
 0x4b6   :  { %v1728_v22 = vpop.permute.xlu1 %1727  ;;  %v1791_v60 = vsel %vm1787_vm12, %v1774_v10, %v1730_v20  ;;  %v4841_v10 = vld [vmem:[%s5370_s12] sm:$0xff] }
 0x4b7   :  { %v1790_v34 = vsel %vm1787_vm12, %v1773_v21, %v1728_v22 }
 0x4b8   :  { %3711 = vmatprep.mubr.msk.f32.mxu0 %vm1810_vm13, %v1790_v34 }
 0x4b9   :  { %v1686_v23 = vpop.permute.xlu0 %1685  ;;  %3712 = vmatmul.mubr.msk.f32.gmra.mrb[20].mxu0 %vm1810_vm13, %v1791_v60 }
 0x4ba   :  { %v1684_v24 = vpop.permute.xlu1 %1683  ;;  %v1776_v55 = vsel %vm60_vm2, %v4597_v13, %v1686_v23 }
 0x4bb   :  { %v1775_v31 = vsel %vm60_vm2, %v4600_v14, %v1684_v24 }
 0x4bd   :  { %v1734_v33 = vpop.permute.xlu0 %1733 }
 0x4be   :  { %v1732_v35 = vpop.permute.xlu1 %1731  ;;  %v1793_v32 = vsel %vm1787_vm12, %v1776_v55, %v1734_v33 }
 0x4bf   :  { %v1792_v54 = vsel %vm1787_vm12, %v1775_v31, %v1732_v35  ;;  %v2303_v31 = vld [vmem:[%s5365_s7] sm:$0xff]  ;;  %v2304_v35 = vld [vmem:[%s5365_s7 + $0x8] sm:$0xff] }
 0x4c0   :  { %3714 = vmatprep.mubr.msk.f32.mxu0 %vm1810_vm13, %v1792_v54 }
 0x4c1   :  { %v1690_v36 = vpop.permute.xlu0 %1689  ;;  %3715 = vmatmul.mubr.msk.f32.gmra.mrb[22].mxu0 %vm1810_vm13, %v1793_v32 }
 0x4c2   :  { %v1688_v37 = vpop.permute.xlu1 %1687  ;;  %v1778_v14 = vsel %vm60_vm2, %v4625_v26, %v1690_v36  ;;  %v2305_v36 = vld [vmem:[%s5365_s7 + $0x10] sm:$0xff]  ;;  %s4072_s7 = smov 16  }
 0x4c3   :  { %v1777_v40 = vsel %vm60_vm2, %v4628_v27, %v1688_v37 }
 0x4c5   :  { %v1738_v38 = vpop.permute.xlu0 %1737 }
 0x4c6   :  { %v1736_v41 = vpop.permute.xlu1 %1735  ;;  %v1795_v42 = vsel %vm1787_vm12, %v1778_v14, %v1738_v38 }
 0x4c7   :  { %v1794_v13 = vsel %vm1787_vm12, %v1777_v40, %v1736_v41 }
 0x4c8   :  { %3717 = vmatprep.mubr.msk.f32.mxu0 %vm1810_vm13, %v1794_v13 }
 0x4c9   :  { %3718 = vmatmul.mubr.msk.f32.gmra.mrb[24].mxu0 %vm1810_vm13, %v1795_v42 }
 0x4ed   :  { %v1692_v46 = vpop.permute.xlu1 %1691 }
 0x4ee   :  { %v1779_v27 = vsel %vm60_vm2, %v1651_v47, %v1692_v46 }
 0x4f1   :  { %v1694_v48 = vpop.permute.xlu0 %1693  ;;  %v1740_v51 = vpop.permute.xlu1 %1739 }
 0x4f2   :  { %v1796_v26 = vsel %vm1787_vm12, %v1779_v27, %v1740_v51  ;;  %v1780_v52 = vsel %vm60_vm2, %v4684_v59, %v1694_v48 }
 0x4f3   :  { %3720 = vmatprep.mubr.msk.f32.mxu0 %vm1810_vm13, %v1796_v26 }
 0x4f5   :  { %v1742_v53 = vpop.permute.xlu0 %1741 }
 0x4f6   :  { %v1797_v57 = vsel %vm1787_vm12, %v1780_v52, %v1742_v53 }
 0x4f7   :  { %3721 = vmatmul.mubr.msk.f32.gmra.mrb[26].mxu0 %vm1810_vm13, %v1797_v57 }
 0x509   :  { %v1698_v58 = vpop.permute.xlu0 %1697 }
 0x50a   :  { %v1696_v0 = vpop.permute.xlu1 %1695  ;;  %v1782_v4 = vsel %vm60_vm2, %v4718_v25, %v1698_v58 }
 0x50b   :  { %v1781_v56 = vsel %vm60_vm2, %v4721_v28, %v1696_v0 }
 0x50d   :  { %v1746_v1 = vpop.permute.xlu0 %1745 }
 0x50e   :  { %v1744_v3 = vpop.permute.xlu1 %1743  ;;  %v1799_v7 = vsel %vm1787_vm12, %v1782_v4, %v1746_v1 }
 0x50f   :  { %v1798_v6 = vsel %vm1787_vm12, %v1781_v56, %v1744_v3 }
 0x510   :  { %3723 = vmatprep.mubr.msk.f32.mxu0 %vm1810_vm13, %v1798_v6 }
 0x511   :  { %v1702_v59 = vpop.permute.xlu0 %1701  ;;  %3724 = vmatmul.mubr.msk.f32.gmra.mrb[28].mxu0 %vm1810_vm13, %v1799_v7 }
 0x512   :  { %v1700_v11 = vpop.permute.xlu1 %1699  ;;  %v1784_v28 = vsel %vm60_vm2, %v4745_v49, %v1702_v59 }
 0x513   :  { %v1783_v30 = vsel %vm60_vm2, %v4748_v50, %v1700_v11 }
 0x515   :  { %v1750_v29 = vpop.permute.xlu0 %1749 }
 0x516   :  { %v1748_v16 = vpop.permute.xlu1 %1747  ;;  %v1801_v17 = vsel %vm1787_vm12, %v1784_v28, %v1750_v29 }
 0x517   :  { %v1800_v25 = vsel %vm1787_vm12, %v1783_v30, %v1748_v16 }
 0x518   :  { %3726 = vmatprep.mubr.msk.f32.mxu0 %vm1810_vm13, %v1800_v25 }
 0x519   :  { %v1706_v18 = vpop.permute.xlu0 %1705  ;;  %3727 = vmatmul.mubr.msk.f32.gmra.mrb[30].mxu0 %vm1810_vm13, %v1801_v17 }
 0x51a   :  { %v1704_v19 = vpop.permute.xlu1 %1703  ;;  %v1786_v50 = vsel %vm60_vm2, %v4769_v12, %v1706_v18 }
 0x51b   :  { %v1785_v20 = vsel %vm60_vm2, %v4772_v15, %v1704_v19  ;;  %v4846_v15 = vrot.slane %v4841_v10, %v58_v9  ;;  %v3877_v9 = vpack.c.bf16 %v2304_v35, %v2303_v31 }
 0x51d   :  { %v1754_v61 = vpop.permute.xlu0 %1753  ;;  %3878 = vmatprep.subr.bf16.mxu1 %v3877_v9 }
 0x51e   :  { %v1752_v21 = vpop.permute.xlu1 %1751  ;;  %v1803_v22 = vsel %vm1787_vm12, %v1786_v50, %v1754_v61  ;;  %3880 = vmatpush3.bf16.msra.mxu1 %v3877_v9 }
 0x51f   :  { %v1802_v49 = vsel %vm1787_vm12, %v1785_v20, %v1752_v21  ;;  %3736 = vmatprep.subr.mxu1 %v2305_v36  ;;  %vm2785_vm12 = vcmask 785408  }
 0x520   :  { %3729 = vmatprep.mubr.msk.f32.mxu0 %vm1810_vm13, %v1802_v49 }
 0x521   :  { %3730 = vmatmul.mubr.msk.f32.gmra.mrb[32].mxu0 %vm1810_vm13, %v1803_v22 }
 0x522   :  { %3737 = vmatpush3.msra.mxu1 %v2305_v36 }
 0x584   :  { %v3710_v34 = vpop.f32.mrb[18].mxu0 }
 0x585   :  { %v1934_v12 = vadd.f32 %v3710_v34, %v4846_v15  ;;  %v1928_v60 = vpop.f32.mrb[19].mxu0 }
 0x586   :  { %v1929_v23 = vadd.f32 %v1928_v60, %v4846_v15 }
 0x587   :  { %v2008_v24 = vmax.f32 %v1934_v12, 0.0 }
 0x588   :  { %v2007_v33 = vmax.f32 %v1929_v23, 0.0 }
 0x589   :  { %2024 = vst.msk [vmem:[#allocation3 + $0x8] sm:$0xff] %vm149_vm4, %v2008_v24 }
 0x58a   :  { %2023 = vst.msk [vmem:[#allocation3] sm:$0xff] %vm149_vm4, %v2007_v33 }
 0x58c   :  { %v3713_v55 = vpop.f32.mrb[20].mxu0 }
 0x58d   :  { %v1944_v54 = vadd.f32 %v3713_v55, %v4846_v15  ;;  %v1938_v32 = vpop.f32.mrb[21].mxu0 }
 0x58e   :  { %v1939_v37 = vadd.f32 %v1938_v32, %v4846_v15 }
 0x58f   :  { %v2010_v38 = vmax.f32 %v1944_v54, 0.0 }
 0x590   :  { %v2009_v40 = vmax.f32 %v1939_v37, 0.0 }
 0x591   :  { %2026 = vst.msk [vmem:[#allocation3 + $0x18] sm:$0xff] %vm149_vm4, %v2010_v38  ;;  %v2039_v41 = vld [vmem:[#allocation3] ss:$2 sm:$0xff]  ;;  %v4867_v44 = vld [vmem:[#allocation3 + $0x1] ss:$2 sm:$0xff] }
 0x592   :  { %2025 = vst.msk [vmem:[#allocation3 + $0x10] sm:$0xff] %vm149_vm4, %v2009_v40  ;;  %2238 = vrot.lane.b32.xlu1 %v2039_v41, %s4071_s27  ;;  %v2078_v51 = vrot.slane %v4867_v44, 7 }
 0x594   :  { %v3716_v14 = vpop.f32.mrb[22].mxu0 }
 0x595   :  { %v1954_v13 = vadd.f32 %v3716_v14, %v4846_v15  ;;  %v1948_v42 = vpop.f32.mrb[23].mxu0 }
 0x596   :  { %v1949_v45 = vadd.f32 %v1948_v42, %v4846_v15  ;;  %2262 = vrot.lane.b32.xlu1 %v4867_v44, %s4072_s7 }
 0x597   :  { %v2012_v46 = vmax.f32 %v1954_v13, 0.0 }
 0x598   :  { %v2011_v47 = vmax.f32 %v1949_v45, 0.0 }
 0x599   :  { %2028 = vst.msk [vmem:[#allocation3 + $0x28] sm:$0xff] %vm149_vm4, %v2012_v46  ;;  %v2041_v27 = vld [vmem:[#allocation3 + $0x10] ss:$2 sm:$0xff]  ;;  %v2057_v48 = vld [vmem:[#allocation3 + $0x11] ss:$2 sm:$0xff] }
 0x59a   :  { %2027 = vst.msk [vmem:[#allocation3 + $0x20] sm:$0xff] %vm149_vm4, %v2011_v47  ;;  %2240 = vrot.lane.b32.xlu0 %v2041_v27, %s4071_s27  ;;  %v2079_v26 = vrot.slane %v2057_v48, 7 }
 0x59c   :  { %v3719_v52 = vpop.f32.mrb[24].mxu0  ;;  %v4879_v53 = vsel %vm1337_vm8, %v2078_v51, %v2079_v26 }
 0x59d   :  { %v1964_v57 = vadd.f32 %v3719_v52, %v4846_v15  ;;  %v1958_v58 = vpop.f32.mrb[25].mxu0 }
 0x59e   :  { %v1959_v0 = vadd.f32 %v1958_v58, %v4846_v15  ;;  %2264 = vrot.lane.b32.xlu0 %v2057_v48, %s4072_s7  ;;  %v2106_v48 = vand.u32 31, %v4173_v8 }
 0x59f   :  { %v2014_v1 = vmax.f32 %v1964_v57, 0.0  ;;  %v2101_v57 = vsel %vm1337_vm8, 0.0, %v2078_v51 }
 0x5a0   :  { %v2013_v56 = vmax.f32 %v1959_v0, 0.0  ;;  %vm2198_vm15 = vcmp.eq.s32.totalorder %v2106_v48, 0  ;;  %v2592_v48 = vld [vmem:[%s5366_s8 + $0x28] sm:$0xff] }
 0x5a1   :  { %2030 = vst.msk [vmem:[#allocation3 + $0x38] sm:$0xff] %vm149_vm4, %v2014_v1  ;;  %v2043_v3 = vld [vmem:[#allocation3 + $0x20] ss:$2 sm:$0xff]  ;;  %v2059_v4 = vld [vmem:[#allocation3 + $0x21] ss:$2 sm:$0xff]  ;;  %v2222_v1 = vsel %vm2198_vm15, 0.0, %v2101_v57 }
 0x5a2   :  { %2029 = vst.msk [vmem:[#allocation3 + $0x30] sm:$0xff] %vm149_vm4, %v2013_v56  ;;  %2242 = vrot.lane.b32.xlu1 %v2043_v3, %s4071_s27  ;;  %v2081_v6 = vrot.slane %v2059_v4, 7 }
 0x5a4   :  { %v4888_v7 = vsel %vm1337_vm8, %v2079_v26, %v2081_v6 }
 0x5a6   :  { %2266 = vrot.lane.b32.xlu1 %v2059_v4, %s4072_s7 }
 0x5a9   :  { %v2045_v59 = vld [vmem:[#allocation3 + $0x30] ss:$2 sm:$0xff]  ;;  %v2061_v11 = vld [vmem:[#allocation3 + $0x31] ss:$2 sm:$0xff] }
 0x5aa   :  { %2244 = vrot.lane.b32.xlu0 %v2045_v59, %s4071_s27  ;;  %v2083_v29 = vrot.slane %v2061_v11, 7 }
 0x5ac   :  { %v4893_v30 = vsel %vm1337_vm8, %v2081_v6, %v2083_v29 }
 0x5ae   :  { %2268 = vrot.lane.b32.xlu0 %v2061_v11, %s4072_s7 }
 0x5ca   :  { %v3722_v16 = vpop.f32.mrb[26].mxu0 }
 0x5cb   :  { %v1974_v28 = vadd.f32 %v3722_v16, %v4846_v15  ;;  %v1968_v25 = vpop.f32.mrb[27].mxu0 }
 0x5cc   :  { %v1969_v17 = vadd.f32 %v1968_v25, %v4846_v15 }
 0x5cd   :  { %v2016_v18 = vmax.f32 %v1974_v28, 0.0 }
 0x5ce   :  { %v2015_v19 = vmax.f32 %v1969_v17, 0.0 }
 0x5cf   :  { %2032 = vst.msk [vmem:[#allocation3 + $0x48] sm:$0xff] %vm149_vm4, %v2016_v18 }
 0x5d0   :  { %2031 = vst.msk [vmem:[#allocation3 + $0x40] sm:$0xff] %vm149_vm4, %v2015_v19  ;;  %v1391_v19 = vadd.s32 32, %v4173_v8 }
 0x5d7   :  { %v2047_v61 = vld [vmem:[#allocation3 + $0x40] ss:$2 sm:$0xff]  ;;  %v2063_v20 = vld [vmem:[#allocation3 + $0x41] ss:$2 sm:$0xff] }
 0x5d8   :  { %2246 = vrot.lane.b32.xlu1 %v2047_v61, %s4071_s27  ;;  %v2085_v21 = vrot.slane %v2063_v20, 7  ;;  %v2134_v61 = vand.u32 31, %v1391_v19 }
 0x5da   :  { %v4902_v50 = vsel %vm1337_vm8, %v2083_v29, %v2085_v21  ;;  %vm2202_vm2 = vcmp.eq.s32.totalorder %v2134_v61, 0 }
 0x5dc   :  { %2270 = vrot.lane.b32.xlu1 %v2063_v20, %s4072_s7 }
 0x5e4   :  { %v3725_v49 = vpop.f32.mrb[28].mxu0 }
 0x5e5   :  { %v1984_v22 = vadd.f32 %v3725_v49, %v4846_v15  ;;  %v1978_v34 = vpop.f32.mrb[29].mxu0 }
 0x5e6   :  { %v1979_v12 = vadd.f32 %v1978_v34, %v4846_v15 }
 0x5e7   :  { %v2018_v60 = vmax.f32 %v1984_v22, 0.0 }
 0x5e8   :  { %v2017_v23 = vmax.f32 %v1979_v12, 0.0 }
 0x5e9   :  { %2034 = vst.msk [vmem:[#allocation3 + $0x58] sm:$0xff] %vm149_vm4, %v2018_v60 }
 0x5ea   :  { %2033 = vst.msk [vmem:[#allocation3 + $0x50] sm:$0xff] %vm149_vm4, %v2017_v23 }
 0x5ec   :  { %v3728_v24 = vpop.f32.mrb[30].mxu0 }
 0x5ed   :  { %v1994_v33 = vadd.f32 %v3728_v24, %v4846_v15  ;;  %v1988_v31 = vpop.f32.mrb[31].mxu0 }
 0x5ee   :  { %v1989_v35 = vadd.f32 %v1988_v31, %v4846_v15 }
 0x5ef   :  { %v2020_v9 = vmax.f32 %v1994_v33, 0.0 }
 0x5f0   :  { %v2019_v55 = vmax.f32 %v1989_v35, 0.0 }
 0x5f1   :  { %2036 = vst.msk [vmem:[#allocation3 + $0x68] sm:$0xff] %vm149_vm4, %v2020_v9  ;;  %v2049_v54 = vld [vmem:[#allocation3 + $0x50] ss:$2 sm:$0xff]  ;;  %v2065_v32 = vld [vmem:[#allocation3 + $0x51] ss:$2 sm:$0xff] }
 0x5f2   :  { %2035 = vst.msk [vmem:[#allocation3 + $0x60] sm:$0xff] %vm149_vm4, %v2019_v55  ;;  %2248 = vrot.lane.b32.xlu0 %v2049_v54, %s4071_s27  ;;  %v2087_v36 = vrot.slane %v2065_v32, 7  ;;  %v2309_v54 = vrot.slane %v4841_v10, %v141_v39  ;;  %v2589_v39 = vld [vmem:[%s5366_s8 + $0x10] sm:$0xff] }
 0x5f4   :  { %v3731_v37 = vpop.f32.mrb[32].mxu0  ;;  %v2088_v38 = vsel %vm1337_vm8, %v2085_v21, %v2087_v36 }
 0x5f5   :  { %v2004_v40 = vadd.f32 %v3731_v37, %v4846_v15  ;;  %v1998_v41 = vpop.f32.mrb[33].mxu0 }
 0x5f6   :  { %v1999_v14 = vadd.f32 %v1998_v41, %v4846_v15  ;;  %2272 = vrot.lane.b32.xlu0 %v2065_v32, %s4072_s7 }
 0x5f7   :  { %v2022_v13 = vmax.f32 %v2004_v40, 0.0 }
 0x5f8   :  { %v2021_v42 = vmax.f32 %v1999_v14, 0.0  ;;  %v2587_v14 = vld [vmem:[%s5366_s8] sm:$0xff] }
 0x5f9   :  { %2038 = vst.msk [vmem:[#allocation3 + $0x78] sm:$0xff] %vm149_vm4, %v2022_v13  ;;  %v2051_v45 = vld [vmem:[#allocation3 + $0x60] ss:$2 sm:$0xff]  ;;  %v2067_v46 = vld [vmem:[#allocation3 + $0x61] ss:$2 sm:$0xff] }
 0x5fa   :  { %2037 = vst.msk [vmem:[#allocation3 + $0x70] sm:$0xff] %vm149_vm4, %v2021_v42  ;;  %2250 = vrot.lane.b32.xlu1 %v2051_v45, %s4071_s27  ;;  %v2089_v47 = vrot.slane %v2067_v46, 7  ;;  %v2588_v13 = vld [vmem:[%s5366_s8 + $0x8] sm:$0xff]  ;;  %v2590_v45 = vld [vmem:[%s5366_s8 + $0x18] sm:$0xff] }
 0x5fb   :  { %v3881_v42 = vpack.c.bf16 %v2588_v13, %v2587_v14 }
 0x5fc   :  { %v2090_v27 = vsel %vm1337_vm8, %v2087_v36, %v2089_v47 }
 0x5fd   :  { %3882 = vmatprep.subr.bf16.mxu0 %v3881_v42 }
 0x5fe   :  { %2274 = vrot.lane.b32.xlu1 %v2067_v46, %s4072_s7  ;;  %v3885_v46 = vpack.c.bf16 %v2590_v45, %v2589_v39  ;;  %3884 = vmatpush3.bf16.msra.mxu0 %v3881_v42 }
 0x600   :  { %3886 = vmatprep.subr.bf16.mxu0 %v3885_v46 }
 0x601   :  { %v2053_v15 = vld [vmem:[#allocation3 + $0x70] ss:$2 sm:$0xff]  ;;  %v2069_v26 = vld [vmem:[#allocation3 + $0x71] ss:$2 sm:$0xff] }
 0x602   :  { %2252 = vrot.lane.b32.xlu0 %v2053_v15, %s4071_s27  ;;  %v2091_v52 = vrot.slane %v2069_v26, 7  ;;  %3888 = vmatpush3.bf16.msra.mxu0 %v3885_v46 }
 0x604   :  { %v2239_v58 = vpop.permute.xlu1 %2238  ;;  %v2092_v0 = vsel %vm1337_vm8, %v2089_v47, %v2091_v52 }
 0x605   :  { %v2286_v56 = vsel %vm149_vm4, %v2222_v1, %v2239_v58 }
 0x606   :  { %2276 = vrot.lane.b32.xlu0 %v2069_v26, %s4072_s7 }
 0x608   :  { %v2263_v3 = vpop.permute.xlu1 %2262 }
 0x609   :  { %v2295_v4 = vsel %vm2294_vm0, %v2286_v56, %v2263_v3 }
 0x60a   :  { %3738 = vmatprep.mubr.msk.f32.mxu1 %vm502_vm5, %v2295_v4 }
 0x60c   :  { %v2241_v6 = vpop.permute.xlu0 %2240 }
 0x60d   :  { %v2287_v44 = vsel %vm149_vm4, %v4879_v53, %v2241_v6 }
 0x610   :  { %v2265_v51 = vpop.permute.xlu0 %2264 }
 0x611   :  { %v2296_v59 = vsel %vm2294_vm0, %v2287_v44, %v2265_v51 }
 0x612   :  { %3739 = vmatmul.mubr.msk.f32.vlgmr.msra.gmra.mrb[22].mxu1 %vm502_vm5, %v2296_v59 }
 0x614   :  { %v2243_v11 = vpop.permute.xlu1 %2242 }
 0x615   :  { %v2288_v29 = vsel %vm149_vm4, %v4888_v7, %v2243_v11  ;;  %v2226_v7 = vsel %vm2202_vm2, 0.0, %v4902_v50 }
 0x618   :  { %v2267_v16 = vpop.permute.xlu1 %2266 }
 0x619   :  { %v2297_v28 = vsel %vm2294_vm0, %v2288_v29, %v2267_v16 }
 0x61a   :  { %3741 = vmatprep.mubr.msk.f32.mxu1 %vm502_vm5, %v2297_v28 }
 0x61c   :  { %v2245_v25 = vpop.permute.xlu0 %2244 }
 0x61d   :  { %v2289_v17 = vsel %vm149_vm4, %v4893_v30, %v2245_v25 }
 0x620   :  { %v2269_v18 = vpop.permute.xlu0 %2268 }
 0x621   :  { %v2298_v53 = vsel %vm2294_vm0, %v2289_v17, %v2269_v18 }
 0x622   :  { %3742 = vmatmul.mubr.msk.f32.gmra.mrb[24].mxu1 %vm502_vm5, %v2298_v53 }
 0x64a   :  { %v2247_v20 = vpop.permute.xlu1 %2246 }
 0x64b   :  { %v2290_v21 = vsel %vm149_vm4, %v2226_v7, %v2247_v20 }
 0x64e   :  { %v2271_v49 = vpop.permute.xlu1 %2270 }
 0x64f   :  { %v2299_v22 = vsel %vm2294_vm0, %v2290_v21, %v2271_v49 }
 0x650   :  { %3744 = vmatprep.mubr.msk.f32.mxu1 %vm502_vm5, %v2299_v22 }
 0x664   :  { %v2249_v30 = vpop.permute.xlu0 %2248 }
 0x665   :  { %v2291_v34 = vsel %vm149_vm4, %v2088_v38, %v2249_v30 }
 0x668   :  { %v2273_v12 = vpop.permute.xlu0 %2272 }
 0x669   :  { %v2300_v60 = vsel %vm2294_vm0, %v2291_v34, %v2273_v12  ;;  %v2490_v34 = vand.u32 15, %v4173_v8 }
 0x66a   :  { %3745 = vmatmul.mubr.msk.f32.gmra.mrb[26].mxu1 %vm502_vm5, %v2300_v60 }
 0x66c   :  { %v2251_v23 = vpop.permute.xlu1 %2250 }
 0x66d   :  { %v2292_v24 = vsel %vm149_vm4, %v2090_v27, %v2251_v23  ;;  %v2591_v27 = vld [vmem:[%s5366_s8 + $0x20] sm:$0xff] }
 0x66e   :  { %v3889_v26 = vpack.c.bf16 %v2592_v48, %v2591_v27  ;;  %v2596_v27 = vrot.slane %v4841_v10, %v226_v5  ;;  %v2771_v5 = vld [vmem:[%s5367_s9 + $0x10] sm:$0xff] }
 0x670   :  { %v2275_v33 = vpop.permute.xlu1 %2274  ;;  %3890 = vmatprep.subr.bf16.mxu0 %v3889_v26 }
 0x671   :  { %v2301_v50 = vsel %vm2294_vm0, %v2292_v24, %v2275_v33  ;;  %3892 = vmatpush3.bf16.msra.mxu0 %v3889_v26 }
 0x672   :  { %3747 = vmatprep.mubr.msk.f32.mxu1 %vm502_vm5, %v2301_v50 }
 0x674   :  { %v2253_v31 = vpop.permute.xlu0 %2252 }
 0x675   :  { %v2293_v35 = vsel %vm149_vm4, %v2092_v0, %v2253_v31 }
 0x678   :  { %v2277_v9 = vpop.permute.xlu0 %2276 }
 0x679   :  { %v2302_v55 = vsel %vm2294_vm0, %v2293_v35, %v2277_v9 }
 0x67a   :  { %3748 = vmatmul.mubr.msk.f32.gmra.mrb[28].mxu1 %vm502_vm5, %v2302_v55  ;;  %vm2534_vm5 = vcmp.eq.s32.totalorder %v2490_v34, 0 }
 0x6e5   :  { %v3740_v32 = vpop.f32.mrb[22].mxu1 }
 0x6e6   :  { %v2406_v36 = vadd.f32 %v3740_v32, %v2309_v54  ;;  %v2400_v37 = vpop.f32.mrb[23].mxu1 }
 0x6e7   :  { %v2401_v38 = vadd.f32 %v2400_v37, %v2309_v54 }
 0x6e8   :  { %v2440_v40 = vmax.f32 %v2406_v36, 0.0  ;;  %v1389_v36 = vadd.s32 16, %v4173_v8 }
 0x6e9   :  { %v2439_v41 = vmax.f32 %v2401_v38, 0.0 }
 0x6ea   :  { %2448 = vst.msk [vmem:[#allocation4 + $0x8] sm:$0xff] %vm2294_vm0, %v2440_v40  ;;  %v2504_v37 = vand.u32 15, %v1389_v36 }
 0x6eb   :  { %2447 = vst.msk [vmem:[#allocation4] sm:$0xff] %vm2294_vm0, %v2439_v41 }
 0x6ec   :  { %vm2536_vm9 = vcmp.eq.s32.totalorder %v2504_v37, 0 }
 0x6f2   :  { %v2455_v47 = vld [vmem:[#allocation4] ss:$2 sm:$0xff]  ;;  %v2463_v58 = vld [vmem:[#allocation4 + $0x1] ss:$2 sm:$0xff] }
 0x6f3   :  { %2554 = vrot.lane.b32.xlu1 %v2455_v47, %s4072_s7  ;;  %v2474_v30 = vrot.slane %v2463_v58, 7 }
 0x6f5   :  { %v3743_v15 = vpop.f32.mrb[24].mxu1  ;;  %v2485_v12 = vsel %vm1337_vm8, 0.0, %v2474_v30 }
 0x6f6   :  { %v2416_v52 = vadd.f32 %v3743_v15, %v2309_v54  ;;  %v2410_v57 = vpop.f32.mrb[25].mxu1  ;;  %v2546_v23 = vsel %vm2534_vm5, 0.0, %v2485_v12 }
 0x6f7   :  { %v2411_v0 = vadd.f32 %v2410_v57, %v2309_v54  ;;  %2566 = vrot.lane.b32.xlu1 %v2463_v58, %s4073_s4 }
 0x6f8   :  { %v2442_v1 = vmax.f32 %v2416_v52, 0.0 }
 0x6f9   :  { %v2441_v56 = vmax.f32 %v2411_v0, 0.0  ;;  %v2769_v0 = vld [vmem:[%s5367_s9] sm:$0xff] }
 0x6fa   :  { %2450 = vst.msk [vmem:[#allocation4 + $0x18] sm:$0xff] %vm2294_vm0, %v2442_v1  ;;  %v2770_v1 = vld [vmem:[%s5367_s9 + $0x8] sm:$0xff] }
 0x6fb   :  { %2449 = vst.msk [vmem:[#allocation4 + $0x10] sm:$0xff] %vm2294_vm0, %v2441_v56  ;;  %v3893_v56 = vpack.c.bf16 %v2770_v1, %v2769_v0  ;;  %v2925_v0 = vld [vmem:[%s5368_s10 + $0x98] sm:$0xff]  ;;  %v2956_v1 = vld [vmem:[%s5368_s10 + $0x190] sm:$0xff] }
 0x6fd   :  { %3894 = vmatprep.subr.bf16.mxu1 %v3893_v56 }
 0x6fe   :  { %3896 = vmatpush3.bf16.msra.mxu1 %v3893_v56 }
 0x702   :  { %v2457_v3 = vld [vmem:[#allocation4 + $0x10] ss:$2 sm:$0xff]  ;;  %v2465_v4 = vld [vmem:[#allocation4 + $0x11] ss:$2 sm:$0xff] }
 0x703   :  { %2556 = vrot.lane.b32.xlu0 %v2457_v3, %s4072_s7  ;;  %v2475_v31 = vrot.slane %v2465_v4, 7  ;;  %v2772_v3 = vld [vmem:[%s5367_s9 + $0x18] sm:$0xff] }
 0x705   :  { %v2476_v9 = vsel %vm1337_vm8, %v2474_v30, %v2475_v31 }
 0x707   :  { %2568 = vrot.lane.b32.xlu0 %v2465_v4, %s4073_s4  ;;  %v3897_v4 = vpack.c.bf16 %v2772_v3, %v2771_v5  ;;  %v2957_v5 = vld [vmem:[%s5368_s10 + $0x198] sm:$0xff] }
 0x708   :  { %v3953_v3 = vpack.c.bf16 %v2957_v5, %v2956_v1  ;;  %v2966_v1 = vld [vmem:[%s5368_s10 + $0x1e0] sm:$0xff]  ;;  %v2967_v5 = vld [vmem:[%s5368_s10 + $0x1e8] sm:$0xff] }
 0x709   :  { %3898 = vmatprep.subr.bf16.mxu1 %v3897_v4 }
 0x70a   :  { %3900 = vmatpush3.bf16.msra.mxu1 %v3897_v4  ;;  %v2908_v4 = vld [vmem:[%s5368_s10 + $0x10] sm:$0xff] }
 0x73d   :  { %v3746_v6 = vpop.f32.mrb[26].mxu1 }
 0x73e   :  { %v2426_v44 = vadd.f32 %v3746_v6, %v2309_v54  ;;  %v2420_v51 = vpop.f32.mrb[27].mxu1  ;;  %v2773_v6 = vld [vmem:[%s5367_s9 + $0x20] sm:$0xff] }
 0x73f   :  { %v2421_v59 = vadd.f32 %v2420_v51, %v2309_v54 }
 0x740   :  { %v2444_v11 = vmax.f32 %v2426_v44, 0.0  ;;  %v2774_v44 = vld [vmem:[%s5367_s9 + $0x28] sm:$0xff] }
 0x741   :  { %v2443_v29 = vmax.f32 %v2421_v59, 0.0  ;;  %v3901_v51 = vpack.c.bf16 %v2774_v44, %v2773_v6  ;;  %v2775_v59 = vld [vmem:[%s5367_s9 + $0x30] sm:$0xff]  ;;  %v2909_v6 = vld [vmem:[%s5368_s10 + $0x18] sm:$0xff] }
 0x742   :  { %2452 = vst.msk [vmem:[#allocation4 + $0x28] sm:$0xff] %vm2294_vm0, %v2444_v11  ;;  %v2776_v11 = vld [vmem:[%s5367_s9 + $0x38] sm:$0xff]  ;;  %v2940_v44 = vld [vmem:[%s5368_s10 + $0x110] sm:$0xff] }
 0x743   :  { %2451 = vst.msk [vmem:[#allocation4 + $0x20] sm:$0xff] %vm2294_vm0, %v2443_v29  ;;  %3902 = vmatprep.subr.bf16.mxu1 %v3901_v51 }
 0x744   :  { %3904 = vmatpush3.bf16.msra.mxu1 %v3901_v51  ;;  %v3923_v51 = vpack.c.bf16 %v2909_v6, %v2908_v4  ;;  %v2918_v6 = vld [vmem:[%s5368_s10 + $0x60] sm:$0xff] }
 0x74a   :  { %v2459_v16 = vld [vmem:[#allocation4 + $0x20] ss:$2 sm:$0xff]  ;;  %v2467_v18 = vld [vmem:[#allocation4 + $0x21] ss:$2 sm:$0xff] }
 0x74b   :  { %2558 = vrot.lane.b32.xlu1 %v2459_v16, %s4072_s7  ;;  %v2477_v21 = vrot.slane %v2467_v18, 7  ;;  %v3905_v16 = vpack.c.bf16 %v2776_v11, %v2775_v59  ;;  %v2941_v59 = vld [vmem:[%s5368_s10 + $0x118] sm:$0xff]  ;;  %v2926_v11 = vld [vmem:[%s5368_s10 + $0xa0] sm:$0xff] }
 0x74d   :  { %v3749_v28 = vpop.f32.mrb[28].mxu1  ;;  %v2478_v38 = vsel %vm1337_vm8, %v2475_v31, %v2477_v21  ;;  %3906 = vmatprep.subr.bf16.mxu1 %v3905_v16 }
 0x74e   :  { %v2436_v25 = vadd.f32 %v3749_v28, %v2309_v54  ;;  %v2430_v17 = vpop.f32.mrb[29].mxu1  ;;  %v2548_v41 = vsel %vm2536_vm9, 0.0, %v2478_v38  ;;  %v2777_v28 = vld [vmem:[%s5367_s9 + $0x40] sm:$0xff]  ;;  %3908 = vmatpush3.bf16.msra.mxu1 %v3905_v16  ;;  %v3955_v16 = vpack.c.bf16 %v2941_v59, %v2940_v44  ;;  %v2919_v44 = vld [vmem:[%s5368_s10 + $0x68] sm:$0xff] }
 0x74f   :  { %v2431_v53 = vadd.f32 %v2430_v17, %v2309_v54  ;;  %2570 = vrot.lane.b32.xlu1 %v2467_v18, %s4073_s4  ;;  %v2950_v59 = vld [vmem:[%s5368_s10 + $0x160] sm:$0xff] }
 0x750   :  { %v2446_v19 = vmax.f32 %v2436_v25, 0.0  ;;  %v2778_v25 = vld [vmem:[%s5367_s9 + $0x48] sm:$0xff] }
 0x751   :  { %v2445_v61 = vmax.f32 %v2431_v53, 0.0  ;;  %v3909_v18 = vpack.c.bf16 %v2778_v25, %v2777_v28  ;;  %v2779_v53 = vld [vmem:[%s5367_s9 + $0x50] sm:$0xff]  ;;  %v2958_v25 = vld [vmem:[%s5368_s10 + $0x1a0] sm:$0xff] }
 0x752   :  { %2454 = vst.msk [vmem:[#allocation4 + $0x38] sm:$0xff] %vm2294_vm0, %v2446_v19  ;;  %v2780_v19 = vld [vmem:[%s5367_s9 + $0x58] sm:$0xff] }
 0x753   :  { %2453 = vst.msk [vmem:[#allocation4 + $0x30] sm:$0xff] %vm2294_vm0, %v2445_v61  ;;  %3910 = vmatprep.subr.bf16.mxu1 %v3909_v18 }
 0x754   :  { %3912 = vmatpush3.bf16.msra.mxu1 %v3909_v18  ;;  %v2910_v18 = vld [vmem:[%s5368_s10 + $0x20] sm:$0xff] }
 0x75a   :  { %v2461_v20 = vld [vmem:[#allocation4 + $0x30] ss:$2 sm:$0xff]  ;;  %v2469_v7 = vld [vmem:[#allocation4 + $0x31] ss:$2 sm:$0xff] }
 0x75b   :  { %2560 = vrot.lane.b32.xlu0 %v2461_v20, %s4072_s7  ;;  %v2479_v49 = vrot.slane %v2469_v7, 7  ;;  %v3913_v20 = vpack.c.bf16 %v2780_v19, %v2779_v53  ;;  %v2911_v19 = vld [vmem:[%s5368_s10 + $0x28] sm:$0xff] }
 0x75d   :  { %v2480_v22 = vsel %vm1337_vm8, %v2477_v21, %v2479_v49  ;;  %3914 = vmatprep.subr.bf16.mxu1 %v3913_v20 }
 0x75e   :  { %3916 = vmatpush3.bf16.msra.mxu1 %v3913_v20  ;;  %v2943_v20 = vld [vmem:[%s5368_s10 + $0x128] sm:$0xff] }
 0x75f   :  { %2572 = vrot.lane.b32.xlu0 %v2469_v7, %s4073_s4 }
 0x765   :  { %v2555_v60 = vpop.permute.xlu1 %2554 }
 0x766   :  { %v2578_v24 = vsel %vm2294_vm0, %v2546_v23, %v2555_v60  ;;  %v2722_v23 = vand.u32 7, %v4173_v8 }
 0x768   :  { %vm2742_vm10 = vcmp.eq.s32.totalorder %v2722_v23, 0  ;;  %v2913_v23 = vld [vmem:[%s5368_s10 + $0x38] sm:$0xff] }
 0x769   :  { %v2567_v33 = vpop.permute.xlu1 %2566 }
 0x76a   :  { %v2583_v50 = vsel %vm2582_vm6, %v2578_v24, %v2567_v33 }
 0x76b   :  { %3762 = vmatprep.mubr.msk.f32.mxu0 %vm2597_vm7, %v2583_v50 }
 0x775   :  { %v2557_v35 = vpop.permute.xlu0 %2556 }
 0x776   :  { %v2579_v55 = vsel %vm2294_vm0, %v2476_v9, %v2557_v35 }
 0x779   :  { %v2569_v54 = vpop.permute.xlu0 %2568 }
 0x77a   :  { %v2584_v32 = vsel %vm2582_vm6, %v2579_v55, %v2569_v54  ;;  %v1388_v55 = vadd.s32 8, %v4173_v8 }
 0x77b   :  { %3763 = vmatmul.mubr.msk.f32.vlgmr.msra.gmra.mrb[34].mxu0 %vm2597_vm7, %v2584_v32 }
 0x77c   :  { %v2729_v32 = vand.u32 7, %v1388_v55  ;;  %v2963_v55 = vld [vmem:[%s5368_s10 + $0x1c8] sm:$0xff] }
 0x77e   :  { %vm2743_vm13 = vcmp.eq.s32.totalorder %v2729_v32, 0 }
 0x7bd   :  { %v2559_v40 = vpop.permute.xlu1 %2558 }
 0x7be   :  { %v2580_v14 = vsel %vm2294_vm0, %v2548_v41, %v2559_v40 }
 0x7c1   :  { %v2571_v13 = vpop.permute.xlu1 %2570 }
 0x7c2   :  { %v2585_v39 = vsel %vm2582_vm6, %v2580_v14, %v2571_v13  ;;  %v2922_v13 = vld [vmem:[%s5368_s10 + $0x80] sm:$0xff] }
 0x7c3   :  { %3765 = vmatprep.mubr.msk.f32.mxu0 %vm2597_vm7, %v2585_v39  ;;  %v2923_v39 = vld [vmem:[%s5368_s10 + $0x88] sm:$0xff] }
 0x7cd   :  { %v2561_v42 = vpop.permute.xlu0 %2560 }
 0x7ce   :  { %v2581_v45 = vsel %vm2294_vm0, %v2480_v22, %v2561_v42  ;;  %v2954_v42 = vld [vmem:[%s5368_s10 + $0x180] sm:$0xff] }
 0x7d1   :  { %v2573_v46 = vpop.permute.xlu0 %2572 }
 0x7d2   :  { %v2586_v47 = vsel %vm2582_vm6, %v2581_v45, %v2573_v46  ;;  %v3917_v45 = vpack.c.bf16 %v2923_v39, %v2922_v13  ;;  %v2955_v46 = vld [vmem:[%s5368_s10 + $0x188] sm:$0xff]  ;;  %v2932_v13 = vld [vmem:[%s5368_s10 + $0xd0] sm:$0xff]  ;;  %v2933_v39 = vld [vmem:[%s5368_s10 + $0xd8] sm:$0xff] }
 0x7d3   :  { %3766 = vmatmul.mubr.msk.f32.gmra.mrb[36].mxu0 %vm2597_vm7, %v2586_v47  ;;  %v2906_v47 = vld [vmem:[%s5368_s10] sm:$0xff] }
 0x7d4   :  { %3918 = vmatprep.subr.bf16.mxu0 %v3917_v45  ;;  %v2965_v45 = vld [vmem:[%s5368_s10 + $0x1d8] sm:$0xff] }
 0x84e   :  { %v3764_v48 = vpop.f32.mrb[34].mxu0 }
 0x84f   :  { %v2682_v15 = vadd.f32 %v3764_v48, %v2596_v27  ;;  %v2676_v26 = vpop.f32.mrb[35].mxu0  ;;  %v3949_v48 = vpack.c.bf16 %v2955_v46, %v2954_v42  ;;  %v2964_v42 = vld [vmem:[%s5368_s10 + $0x1d0] sm:$0xff] }
 0x850   :  { %v2677_v52 = vadd.f32 %v2676_v26, %v2596_v27  ;;  %v2938_v26 = vld [vmem:[%s5368_s10 + $0x100] sm:$0xff] }
 0x851   :  { %v2696_v57 = vmax.f32 %v2682_v15, 0.0  ;;  %3950 = vmatprep.subr.bf16.mxu1 %v3949_v48  ;;  %v2916_v48 = vld [vmem:[%s5368_s10 + $0x50] sm:$0xff] }
 0x852   :  { %v2695_v58 = vmax.f32 %v2677_v52, 0.0  ;;  %v2939_v52 = vld [vmem:[%s5368_s10 + $0x108] sm:$0xff] }
 0x853   :  { %2700 = vst.msk [vmem:[#allocation5 + $0x8] sm:$0xff] %vm2582_vm6, %v2696_v57  ;;  %v2924_v57 = vld [vmem:[%s5368_s10 + $0x90] sm:$0xff] }
 0x854   :  { %2699 = vst.msk [vmem:[#allocation5] sm:$0xff] %vm2582_vm6, %v2695_v58  ;;  %v3951_v58 = vpack.c.bf16 %v2939_v52, %v2938_v26  ;;  %v3921_v56 = vpack.c.bf16 %v2925_v0, %v2924_v57  ;;  %v2948_v26 = vld [vmem:[%s5368_s10 + $0x150] sm:$0xff]  ;;  %v3969_v52 = vpack.c.bf16 %v2965_v45, %v2964_v42  ;;  %v2949_v57 = vld [vmem:[%s5368_s10 + $0x158] sm:$0xff]  ;;  %v2935_v0 = vld [vmem:[%s5368_s10 + $0xe8] sm:$0xff] }
 0x85b   :  { %v2703_v29 = vld [vmem:[#allocation5] ss:$2 sm:$0xff]  ;;  %v2707_v17 = vld [vmem:[#allocation5 + $0x1] ss:$2 sm:$0xff] }
 0x85c   :  { %2752 = vrot.lane.b32.xlu1 %v2703_v29, %s4073_s4  ;;  %v2712_v60 = vrot.slane %v2707_v17, 7  ;;  %v2927_v29 = vld [vmem:[%s5368_s10 + $0xa8] sm:$0xff] }
 0x85d   :  { %v3925_v28 = vpack.c.bf16 %v2927_v29, %v2926_v11  ;;  %v2951_v11 = vld [vmem:[%s5368_s10 + $0x168] sm:$0xff]  ;;  %v3943_v29 = vpack.c.bf16 %v2919_v44, %v2918_v6  ;;  %v3121_v6 = vld [vmem:[%s5369_s11 + $0x30] sm:$0xff] }
 0x85e   :  { %v2717_v24 = vsel %vm1337_vm8, 0.0, %v2712_v60 }
 0x85f   :  { %v2748_v50 = vsel %vm2742_vm10, 0.0, %v2717_v24 }
 0x860   :  { %2758 = vrot.lane.b32.xlu1 %v2707_v17, %s4074_s17  ;;  %v2959_v17 = vld [vmem:[%s5368_s10 + $0x1a8] sm:$0xff] }
 0x861   :  { %v3957_v53 = vpack.c.bf16 %v2959_v17, %v2958_v25 }
 0x8a6   :  { %v3767_v61 = vpop.f32.mrb[36].mxu0 }
 0x8a7   :  { %v2692_v7 = vadd.f32 %v3767_v61, %v2596_v27  ;;  %v2686_v21 = vpop.f32.mrb[37].mxu0  ;;  %v2942_v61 = vld [vmem:[%s5368_s10 + $0x120] sm:$0xff] }
 0x8a8   :  { %v2687_v49 = vadd.f32 %v2686_v21, %v2596_v27  ;;  %v2907_v27 = vld [vmem:[%s5368_s10 + $0x8] sm:$0xff]  ;;  %v2928_v21 = vld [vmem:[%s5368_s10 + $0xb0] sm:$0xff] }
 0x8a9   :  { %v2698_v22 = vmax.f32 %v2692_v7, 0.0  ;;  %v3919_v15 = vpack.c.bf16 %v2907_v27, %v2906_v47  ;;  %v3927_v7 = vpack.c.bf16 %v2911_v19, %v2910_v18  ;;  %v3937_v27 = vpack.c.bf16 %v2933_v39, %v2932_v13  ;;  %v2936_v19 = vld [vmem:[%s5368_s10 + $0xf0] sm:$0xff] }
 0x8aa   :  { %v2697_v30 = vmax.f32 %v2687_v49, 0.0  ;;  %v2929_v49 = vld [vmem:[%s5368_s10 + $0xb8] sm:$0xff] }
 0x8ab   :  { %2702 = vst.msk [vmem:[#allocation5 + $0x18] sm:$0xff] %vm2582_vm6, %v2698_v22  ;;  %3920 = vmatpush3.bf16.msra.mxu0 %v3919_v15  ;;  %v2960_v22 = vld [vmem:[%s5368_s10 + $0x1b0] sm:$0xff]  ;;  %v2917_v15 = vld [vmem:[%s5368_s10 + $0x58] sm:$0xff] }
 0x8ac   :  { %2701 = vst.msk [vmem:[#allocation5 + $0x10] sm:$0xff] %vm2582_vm6, %v2697_v30  ;;  %3922 = vmatprep.subr.bf16.mxu0 %v3921_v56  ;;  %v3959_v30 = vpack.c.bf16 %v2943_v20, %v2942_v61  ;;  %v3939_v56 = vpack.c.bf16 %v2917_v15, %v2916_v48  ;;  %v2937_v61 = vld [vmem:[%s5368_s10 + $0xf8] sm:$0xff]  ;;  %v2968_v20 = vld [vmem:[%s5368_s10 + $0x1f0] sm:$0xff] }
 0x8af   :  { %3924 = vmatpush3.bf16.msra.mxu0 %v3923_v51  ;;  %v3973_v51 = vpack.c.bf16 %v2967_v5, %v2966_v1  ;;  %v3118_v1 = vld [vmem:[%s5369_s11 + $0x18] sm:$0xff] }
 0x8b0   :  { %3926 = vmatprep.subr.bf16.mxu0 %v3925_v28  ;;  %v5238_v28 = vsub.s32 3, %v4173_v8 }
 0x8b2   :  { %v2784_v25 = vrot.slane %v4841_v10, %v5238_v28  ;;  %v2969_v10 = vld [vmem:[%s5368_s10 + $0x1f8] sm:$0xff] }
 0x8b3   :  { %v2705_v34 = vld [vmem:[#allocation5 + $0x10] ss:$2 sm:$0xff]  ;;  %v2709_v12 = vld [vmem:[#allocation5 + $0x11] ss:$2 sm:$0xff]  ;;  %3928 = vmatpush3.bf16.msra.mxu0 %v3927_v7 }
 0x8b4   :  { %2754 = vrot.lane.b32.xlu0 %v2705_v34, %s4073_s4  ;;  %v2713_v54 = vrot.slane %v2709_v12, 7  ;;  %v3929_v34 = vpack.c.bf16 %v2929_v49, %v2928_v21  ;;  %v3945_v21 = vpack.c.bf16 %v2937_v61, %v2936_v19  ;;  %v2920_v49 = vld [vmem:[%s5368_s10 + $0x70] sm:$0xff]  ;;  %v3130_v61 = vld [vmem:[%s5369_s11 + $0x78] sm:$0xff] }
 0x8b5   :  { %v3129_v19 = vld [vmem:[%s5369_s11 + $0x70] sm:$0xff] }
 0x8b6   :  { %v2714_v36 = vsel %vm1337_vm8, %v2712_v60, %v2713_v54  ;;  %v2912_v60 = vld [vmem:[%s5368_s10 + $0x30] sm:$0xff]  ;;  %3930 = vmatprep.subr.bf16.mxu0 %v3929_v34  ;;  %v3977_v34 = vpack.c.bf16 %v2969_v10, %v2968_v20  ;;  %v4003_v20 = vpack.c.bf16 %v3130_v61, %v3129_v19 }
 0x8b7   :  { %v2749_v38 = vsel %vm2743_vm13, 0.0, %v2714_v36  ;;  %v3931_v54 = vpack.c.bf16 %v2913_v23, %v2912_v60  ;;  %v2952_v60 = vld [vmem:[%s5368_s10 + $0x170] sm:$0xff]  ;;  %v2953_v23 = vld [vmem:[%s5368_s10 + $0x178] sm:$0xff] }
 0x8b8   :  { %2760 = vrot.lane.b32.xlu0 %v2709_v12, %s4074_s17  ;;  %v2961_v12 = vld [vmem:[%s5368_s10 + $0x1b8] sm:$0xff] }
 0x8b9   :  { %v3961_v24 = vpack.c.bf16 %v2961_v12, %v2960_v22  ;;  %3932 = vmatpush3.bf16.msra.mxu0 %v3931_v54  ;;  %v2921_v22 = vld [vmem:[%s5368_s10 + $0x78] sm:$0xff]  ;;  %v4036_v54 = vld [vmem:[%s5370_s12 + $0x8] sm:$0xff] }
 0x8ba   :  { %v3947_v12 = vpack.c.bf16 %v2921_v22, %v2920_v49  ;;  %v4037_v49 = vld [vmem:[%s5370_s12] sm:$0xff]  ;;  %s4076_s12 = smov [#allocation7]  }
 0x8ce   :  { %v2753_v33 = vpop.permute.xlu1 %2752 }
 0x8cf   :  { %v2764_v31 = vsel %vm2582_vm6, %v2748_v50, %v2753_v33  ;;  %v2944_v33 = vld [vmem:[%s5368_s10 + $0x130] sm:$0xff]  ;;  %v2945_v50 = vld [vmem:[%s5368_s10 + $0x138] sm:$0xff] }
 0x8d0   :  { %v3963_v32 = vpack.c.bf16 %v2945_v50, %v2944_v33  ;;  %v3979_v33 = vpack.c.bf16 %v2953_v23, %v2952_v60 }
 0x8d2   :  { %v2759_v35 = vpop.permute.xlu1 %2758 }
 0x8d3   :  { %v2767_v9 = vsel %vm2766_vm11, %v2764_v31, %v2759_v35  ;;  %v2930_v31 = vld [vmem:[%s5368_s10 + $0xc0] sm:$0xff]  ;;  %v2931_v35 = vld [vmem:[%s5368_s10 + $0xc8] sm:$0xff] }
 0x8d4   :  { %3792 = vmatprep.mubr.msk.f32.mxu1 %vm2785_vm12, %v2767_v9  ;;  %v2962_v9 = vld [vmem:[%s5368_s10 + $0x1c0] sm:$0xff]  ;;  %v3933_v36 = vpack.c.bf16 %v2931_v35, %v2930_v31 }
 0x8d6   :  { %3934 = vmatprep.subr.bf16.mxu0 %v3933_v36 }
 0x926   :  { %v2755_v37 = vpop.permute.xlu0 %2754 }
 0x927   :  { %v2765_v40 = vsel %vm2582_vm6, %v2749_v38, %v2755_v37  ;;  %v2914_v37 = vld [vmem:[%s5368_s10 + $0x40] sm:$0xff]  ;;  %v2915_v38 = vld [vmem:[%s5368_s10 + $0x48] sm:$0xff] }
 0x928   :  { %v3935_v46 = vpack.c.bf16 %v2915_v38, %v2914_v37  ;;  %v4075_v38 = vmov 0.0|0.0  }
 0x92a   :  { %v2761_v41 = vpop.permute.xlu0 %2760  ;;  %3936 = vmatpush3.bf16.msra.mxu0 %v3935_v46 }
 0x92b   :  { %v2768_v14 = vsel %vm2766_vm11, %v2765_v40, %v2761_v41  ;;  %v2946_v40 = vld [vmem:[%s5368_s10 + $0x140] sm:$0xff]  ;;  %v3965_v41 = vpack.c.bf16 %v2963_v55, %v2962_v9  ;;  %3938 = vmatprep.subr.bf16.mxu0 %v3937_v27 }
 0x92c   :  { %3793 = vmatmul.mubr.msk.f32.vlgmr.msra.gmra.mrb[30].mxu1 %vm2785_vm12, %v2768_v14  ;;  %v2947_v14 = vld [vmem:[%s5368_s10 + $0x148] sm:$0xff] }
 0x92d   :  { %3952 = vmatpush3.bf16.msra.mxu1 %v3951_v58  ;;  %v3967_v47 = vpack.c.bf16 %v2947_v14, %v2946_v40  ;;  %v2934_v58 = vld [vmem:[%s5368_s10 + $0xe0] sm:$0xff]  ;;  %v3116_v14 = vld [vmem:[%s5369_s11 + $0x8] sm:$0xff] }
 0x92e   :  { %3954 = vmatprep.subr.bf16.mxu1 %v3953_v3  ;;  %v3971_v3 = vpack.c.bf16 %v2949_v57, %v2948_v26  ;;  %v3941_v4 = vpack.c.bf16 %v2935_v0, %v2934_v58  ;;  %3940 = vmatpush3.bf16.msra.mxu0 %v3939_v56  ;;  %v3117_v0 = vld [vmem:[%s5369_s11 + $0x10] sm:$0xff]  ;;  %v3119_v56 = vld [vmem:[%s5369_s11 + $0x20] sm:$0xff] }
 0x92f   :  { %v3985_v5 = vpack.c.bf16 %v3118_v1, %v3117_v0 }
 0x930   :  { %3942 = vmatprep.subr.bf16.mxu0 %v3941_v4 }
 0x931   :  { %3956 = vmatpush3.bf16.msra.mxu1 %v3955_v16  ;;  %v3975_v16 = vpack.c.bf16 %v2951_v11, %v2950_v59  ;;  %v3124_v59 = vld [vmem:[%s5369_s11 + $0x48] sm:$0xff] }
 0x932   :  { %3958 = vmatprep.subr.bf16.mxu1 %v3957_v53  ;;  %3944 = vmatpush3.bf16.msra.mxu0 %v3943_v29  ;;  %v3125_v29 = vld [vmem:[%s5369_s11 + $0x50] sm:$0xff] }
 0x933   :  { %3946 = vmatprep.subr.bf16.mxu0 %v3945_v21 }
 0x935   :  { %3960 = vmatpush3.bf16.msra.mxu1 %v3959_v30 }
 0x936   :  { %3962 = vmatprep.subr.bf16.mxu1 %v3961_v24  ;;  %3948 = vmatpush3.bf16.msra.mxu0 %v3947_v12 }
 0x937   :  { %3981 = vmatprep.subr.bf16.mxu0 %v4075_v38 }
 0x939   :  { %3964 = vmatpush3.bf16.msra.mxu1 %v3963_v32  ;;  %v309_v32 = vrot.slane %v4036_v54, %v5238_v28 }
 0x93a   :  { %3966 = vmatprep.subr.bf16.mxu1 %v3965_v41  ;;  %v3115_v41 = vld [vmem:[%s5369_s11] sm:$0xff] }
 0x93b   :  { %v384_v37 = vadd.f32 %v4454_v43, %v309_v32 }
 0x93d   :  { %3968 = vmatpush3.bf16.msra.mxu1 %v3967_v47 }
 0x93e   :  { %3970 = vmatprep.subr.bf16.mxu1 %v3969_v52  ;;  %v3982_v52 = vpack.c.bf16 %v3116_v14, %v3115_v41 }
 0x941   :  { %3972 = vmatpush3.bf16.msra.mxu1 %v3971_v3  ;;  %v3120_v3 = vld [vmem:[%s5369_s11 + $0x28] sm:$0xff] }
 0x942   :  { %3974 = vmatprep.subr.bf16.mxu1 %v3973_v51  ;;  %v3988_v4 = vpack.c.bf16 %v3120_v3, %v3119_v56  ;;  %v3123_v51 = vld [vmem:[%s5369_s11 + $0x40] sm:$0xff] }
 0x943   :  { %v3994_v11 = vpack.c.bf16 %v3124_v59, %v3123_v51 }
 0x945   :  { %3976 = vmatpush3.bf16.msra.mxu1 %v3975_v16  ;;  %v3126_v16 = vld [vmem:[%s5369_s11 + $0x58] sm:$0xff] }
 0x946   :  { %3978 = vmatprep.subr.bf16.mxu1 %v3977_v34 }
 0x949   :  { %3980 = vmatpush3.bf16.msra.mxu1 %v3979_v33 }
 0x94a   :  { %3830 = vmatprep.subr.mxu1 %v4062_v2 }
 0x9ff   :  { %v3794_v17 = vpop.f32.mrb[30].mxu1 }
 0xa00   :  { %v2864_v18 = vadd.f32 %v3794_v17, %v2784_v25  ;;  %v2858_v53 = vpop.f32.mrb[31].mxu1  ;;  %v3127_v17 = vld [vmem:[%s5369_s11 + $0x60] sm:$0xff] }
 0xa01   :  { %v2859_v7 = vadd.f32 %v2858_v53, %v2784_v25  ;;  %v3997_v25 = vpack.c.bf16 %v3126_v16, %v3125_v29 }
 0xa02   :  { %v2868_v30 = vmax.f32 %v2864_v18, 0.0  ;;  %v3128_v18 = vld [vmem:[%s5369_s11 + $0x68] sm:$0xff] }
 0xa03   :  { %v2867_v24 = vmax.f32 %v2859_v7, 0.0  ;;  %v4000_v53 = vpack.c.bf16 %v3128_v18, %v3127_v17  ;;  %v2972_v7 = vsub.s32 4, %v4173_v8 }
 0xa04   :  { %2870 = vst.msk [vmem:[#allocation6 + $0x8] sm:$0xff] %vm2766_vm11, %v2868_v30 }
 0xa05   :  { %2869 = vst.msk [vmem:[#allocation6] sm:$0xff] %vm2766_vm11, %v2867_v24  ;;  %v2973_v22 = vrot.slane %v4037_v49, %v2972_v7 }
 0xa0c   :  { %v2881_v50 = vld [vmem:[#allocation6 + $0x5] ss:$8 sm:$0x3]  ;;  %v2885_v31 = vld [vmem:[#allocation6 + $0x7] ss:$8 sm:$0x3] }
 0xa0d   :  { %v4029_v35 = vpack.i.bf16 %v2881_v50, %v2885_v31  ;;  %v2873_v9 = vld [vmem:[#allocation6 + $0x1] ss:$8 sm:$0x3]  ;;  %v2877_v55 = vld [vmem:[#allocation6 + $0x3] ss:$8 sm:$0x3] }
 0xa0e   :  { %v4024_v36 = vpack.i.bf16 %v2873_v9, %v2877_v55  ;;  %v2883_v47 = vld [vmem:[#allocation6 + $0x6] ss:$8 sm:$0x3]  ;;  %v2879_v27 = vld [vmem:[#allocation6 + $0x4] ss:$8 sm:$0x3] }
 0xa0f   :  { %4030 = vrot.lane.b32.xlu0 %v4029_v35, %s4074_s17  ;;  %v2875_v43 = vld [vmem:[#allocation6 + $0x2] ss:$8 sm:$0x3]  ;;  %v2871_v15 = vld [vmem:[#allocation6] ss:$8 sm:$0x3] }
 0xa10   :  { %4025 = vrot.lane.b32.xlu1 %v4024_v36, %s4074_s17  ;;  %v52_v50 = vld [vmem:[%s5371_s13 + $0x20] sm:$0xff]  ;;  %v3133_v9 = vsub.s32 5, %v4173_v8  ;;  %s3305_s13 = sshll.u32 %s4076_s12, 4  ;;  %s3306_s13 = int_to_ptr.vmem [resolvable:$true] %s3305_s13 }
 0xa11   :  { %v3216_v31 = vrot.slane %v52_v50, 3  ;;  %s4038_s27 = scalar_lea.vmem %s3306_s13, 32  ;;  %p4043_p1 = scmp.lt.s32.totalorder %s3306_s13, %s3306_s13 }
 0xa12   :  { %v3134_v55 = vrot.slane %v4037_v49, %v3133_v9  ;;  %p4039_p0 = scmp.ne.s32.totalorder %s3306_s13, %s4038_s27  ;;  %p4044_p2 = scmp.lt.s32.totalorder %s4038_s27, %s4038_s27 }
 0xa13   :  { %v3217_v35 = vsel %vm144_vm3, %v311_v63, %v3216_v31 }
 0xa14   :  { %3207 = vperm.xlu1 %4034, %v384_v37   ;;  %v3213_v37 = vrot.slane %v52_v50, %v5238_v28  ;;  %p4045_p3 = por %p4044_p2, %p4043_p1 }
 0xa16   :  { %p4046_p4 = pnand %p4045_p3, %p4039_p0 }
 0xa81   :  { %v4031_v40 = vpop.permute.xlu0 %4030 }
 0xa82   :  { %v4033_v13 = vunpack.i.h.bf16 %v4031_v40  ;;  %v4032_v39 = vunpack.i.l.bf16 %v4031_v40  ;;  %v4026_v42 = vpop.permute.xlu1 %4025 }
 0xa83   :  { %v4028_v45 = vunpack.i.h.bf16 %v4026_v42  ;;  %v4027_v46 = vunpack.i.l.bf16 %v4026_v42 }
 0xa84   :  { %v2905_v48 = vsel %vm2766_vm11, %v2883_v47, %v4032_v39  ;;  %v2904_v26 = vsel %vm2766_vm11, %v2879_v27, %v4033_v13 }
 0xa85   :  { %v2903_v57 = vsel %vm2766_vm11, %v2875_v43, %v4027_v46  ;;  %3108 = vmatprep.mubr.f32.mxu1 %v2905_v48  ;;  %v2902_v58 = vsel %vm2766_vm11, %v2871_v15, %v4028_v45 }
 0xa86   :  { %3038 = vmatprep.mubr.f32.mxu0 %v2903_v57  ;;  %3109 = vmatmul.mubr.f32.vlgmr.msra.gmra.mrb[32].mxu1 %v2904_v26 }
 0xa87   :  { %3039 = vmatmul.mubr.f32.vlgmr.msra.gmra.mrb[38].mxu0 %v2902_v58  ;;  %3832 = vmatprep.mubr.msk.f32.mxu1 %vm4063_vm1, %v4062_v2 }
 0xa88   :  { %3983 = vmatpush3.bf16.msra.mxu0 %v3982_v52  ;;  %3827 = vmatprep.mubr.msk.f32.mxu0 %vm4063_vm1, %v4062_v2  ;;  %v3122_v2 = vld [vmem:[%s5369_s11 + $0x38] sm:$0xff]  ;;  %vm3297_vm1 = vcmask 17408  }
 0xa89   :  { %3984 = vmatprep.subr.bf16.mxu0 %v4075_v38  ;;  %v3991_v44 = vpack.c.bf16 %v3122_v2, %v3121_v6  ;;  %3831 = vmatpush3.msra.mxu1 %v3217_v35 }
 0xa8c   :  { %3986 = vmatpush3.bf16.msra.mxu0 %v3985_v5 }
 0xa8d   :  { %3987 = vmatprep.subr.bf16.mxu0 %v4075_v38 }
 0xa90   :  { %3989 = vmatpush3.bf16.msra.mxu0 %v3988_v4 }
 0xa91   :  { %3990 = vmatprep.subr.bf16.mxu0 %v4075_v38 }
 0xa93   :  { %v3208_v40 = vpop.permute.xlu1 %3207 }
 0xa94   :  { %3992 = vmatpush3.bf16.msra.mxu0 %v3991_v44  ;;  %v3214_v41 = vmul.f32 %v3213_v37, %v3208_v40 }
 0xa95   :  { %3993 = vmatprep.subr.bf16.mxu0 %v4075_v38 }
 0xa98   :  { %3995 = vmatpush3.bf16.msra.mxu0 %v3994_v11 }
 0xa99   :  { %3996 = vmatprep.subr.bf16.mxu0 %v4075_v38 }
 0xa9c   :  { %3998 = vmatpush3.bf16.msra.mxu0 %v3997_v25 }
 0xa9d   :  { %3999 = vmatprep.subr.bf16.mxu0 %v4075_v38 }
 0xaa0   :  { %4001 = vmatpush3.bf16.msra.mxu0 %v4000_v53 }
 0xaa1   :  { %4002 = vmatprep.subr.bf16.mxu0 %v4075_v38  ;;  %v3294_v38 = vsub.s32 6, %v4173_v8 }
 0xaa3   :  { %v3295_v14 = vrot.slane %v4037_v49, %v3294_v38 }
 0xaa4   :  { %4004 = vmatpush3.bf16.msra.mxu0 %v4003_v20 }
 0xb59   :  { %v3576_v21 = vpop.f32.mrb[32].mxu1 }
 0xb5a   :  { %v3541_v10 = vpop.f32.mrb[38].mxu0  ;;  %v3577_v30 = vpop.f32.mrb[33].mxu1 }
 0xb5b   :  { %v3542_v34 = vpop.f32.mrb[39].mxu0  ;;  %v3578_v12 = vadd.f32 %v3577_v30, %v3576_v21 }
 0xb5c   :  { %v3543_v60 = vadd.f32 %v3542_v34, %v3541_v10 }
 0xb5e   :  { %v3041_v23 = vadd.f32 %v3543_v60, %v2973_v22 }
 0xb60   :  { %v3111_v24 = vadd.f32 %v3578_v12, %v3041_v23 }
 0xb62   :  { %v3114_v33 = vmax.f32 %v3111_v24, 0.0 }
 0xb64   :  { %3828 = vmatmul.mubr.f32.vlgmr.msra.gmra.mrb[40].mxu0 %v3114_v33 }
 0xc37   :  { %v3201_v54 = vpop.f32.mrb[40].mxu0 }
 0xc38   :  { %v3202_v32 = vadd.f32 %v3201_v54, %v3134_v55  ;;  %v3829_v36 = vpop.f32.mrb[41].mxu0 }
 0xc3a   :  { %3833 = vmatmul.mubr.msk.f32.vlgmr.msra.gmra.mrb[34].mxu1 %vm149_vm4, %v3202_v32 }
 0xd0d   :  { %v3288_v13 = vpop.f32.mrb[34].mxu1 }
 0xd0e   :  { %v3289_v62 = vadd.f32 %v3288_v13, %v3214_v41  ;;  %v3834_v63 = vpop.f32.mrb[35].mxu1 }
 0xd10   :  { %v3296_v39 = vadd.f32 %v3295_v14, %v3289_v62 }
 0xd12   :  { %3298 = vst.msk [vmem:[#allocation7] sm:$0x3] %vm3297_vm1, %v3296_v39 }
 0xd13   :  { %4049 = shalt.err (!%p4046_p4)
}
 0xd14   :  { %s4050_s29 = scalar_lea.hbm %s5372_s14, 32 }
 0xd15   :  { %p4051_p5 = scmp.ne.s32.totalorder %s5372_s14, %s4050_s29  ;;  %p4054_p6 = scmp.lt.u32.totalorder %s4050_s29, %s5372_s14 }
 0xd17   :  { %p4056_p7 = pnand %p4054_p6, %p4051_p5 }
 0xd19   :  { %4059 = shalt.err (!%p4056_p7)
}
 0xd1a   :  { %3308 = dma.vmem_to_hbm [thread:$0]  %s3306_s13, 32, %s5372_s14, [#allocation8]  }
 0xd1b   :  { %4060 = dma.done.wait [#allocation8], 32  }
 0xd1c   :  { %4061 = vsyncadd [#allocation8], 4294967264 }
 0xd1d   :  { %3312 = vsyncpa [#allocation8], 1 }

</bundles_post_ra>
